<compile_context>
chip_gen: v7x
topology: tpu7x:2x2x1
jax: 0.10.0
libtpu: 0.0.40
codegen_flags: <defaults>
</compile_context>

<pallas_src>
import functools

import jax
import jax.numpy as jnp
import numpy as np
from jax.experimental import pallas as pl
from jax.experimental.pallas import tpu as pltpu


# ---------------------------------------------------------------------------
# Fused HEU Pallas kernel
# ---------------------------------------------------------------------------

def heu_kernel(mask_ref, x_ref, w_ref, wl_ref, fc1_ref, fc2_ref, o_ref, *, H, W, B):
    """One grid step = B images of the HEU forward, fully fused.

    mask_ref: (9, B*HW)      per-tap zero-pad masks (host precomputed; row 4 ==
                             center tap == all ones, reused as the bias ones-row)
    x_ref   : (1, C, B*HW)   input (channels on sublanes, B images folded on lanes)
    w_ref   : (4, C, 9C+1)   BN-folded residual-block conv matrices + bias column
    wl_ref  : (C, 27C+1)     BN-folded fused 'last' conv (3C->C) + bias column
    fc1_ref : (C, Cr)        SE squeeze weight
    fc2_ref : (C, Cr)        SE excite weight
    o_ref   : (1, C, B*HW)   output
    """
    C = x_ref.shape[1]
    HW = H * W
    LANES = B * HW
    f32 = jnp.float32

    ones_row = mask_ref[4:5, :]          # center-tap mask is identically 1.0

    def patch_rows(xc):
        # 9 lane-rolled + masked copies of xc (vreg-resident im2col, tap-major).
        rows = []
        for t in range(9):
            dy, dx = t // 3, t % 3
            s = (dy - 1) * W + (dx - 1)
            sh = xc if s == 0 else pltpu.roll(xc, shift=(-s) % LANES, axis=1)
            if t != 4:                   # center tap needs no boundary mask
                sh = sh * mask_ref[t:t + 1, :]
            rows.append(sh)
        return rows

    def conv(xc, w):
        # (C, 9C+1) @ (9C+1, B*HW): one MXU pass; bias rides the ones-row.
        patch = jnp.concatenate(patch_rows(xc) + [ones_row], axis=0)
        return jnp.dot(w, patch, preferred_element_type=f32)

    x = x_ref[0].astype(f32)                                      # (C, LANES)

    # ResidualBlock 0 / 1 (Conv + folded BN, ReLU, Conv + folded BN, ReLU, +x)
    h = jnp.maximum(conv(x, w_ref[0]), 0.0)
    out1 = x + jnp.maximum(conv(h, w_ref[1]), 0.0)
    h = jnp.maximum(conv(out1, w_ref[2]), 0.0)
    out2 = out1 + jnp.maximum(conv(h, w_ref[3]), 0.0)

    # 'last' Conv3x3(3C->C) + BN over concat([x, out1, out2]) as ONE matmul:
    # K = 27C+1 = 109 <= 128 -> still a single MXU K-pass; no channel concat
    # ever touches HBM.  (Patches of x/out1 are cheaply rebuilt on the XLU/VPU
    # rather than held live across the other convs.)
    big = jnp.concatenate(
        patch_rows(x) + patch_rows(out1) + patch_rows(out2) + [ones_row], axis=0)
    y = jnp.dot(wl_ref[...], big, preferred_element_type=f32)     # (C, LANES)

    # SELayer(reduction=4) -> ReLU -> + x, done per image over static,
    # lane-aligned (multiple-of-128) slices so stores stay unmasked.
    for b in range(B):
        sl = slice(b * HW, (b + 1) * HW)
        yb = y[:, sl]
        xb = x[:, sl]
        pooled = jnp.mean(yb, axis=1, keepdims=True)              # (C, 1)
        hidden = jnp.maximum(
            jnp.sum(pooled * fc1_ref[...], axis=0, keepdims=True), 0.0)    # (1, Cr)
        gate = jax.nn.sigmoid(
            jnp.sum(fc2_ref[...] * hidden, axis=1, keepdims=True))         # (C, 1)
        o_ref[0, :, sl] = (jnp.maximum(yb * gate, 0.0) + xb).astype(o_ref.dtype)


# ---------------------------------------------------------------------------
# Host-side helpers: boundary masks + batch-folding heuristic
# ---------------------------------------------------------------------------

def _make_masks(H, W, B):
    """(9, B*HW) f32 validity mask per 3x3 tap, computed per image."""
    HW = H * W
    local = np.arange(B * HW) % HW
    hh = local // W
    ww = local % W
    masks = np.ones((9, B * HW), np.float32)
    for t in range(9):
        dy, dx = t // 3, t % 3
        m = np.ones(B * HW, np.float32)
        if dy == 0:
            m *= (hh >= 1)
        if dy == 2:
            m *= (hh <= H - 2)
        if dx == 0:
            m *= (ww >= 1)
        if dx == 2:
            m *= (ww <= W - 2)
        masks[t] = m
    return masks


def _images_per_block(N, HW, max_lanes=4096):
    """How many images to fold onto the lane axis per grid step.

    v7x has two TensorCores: keep >= 2 "parallel" grid steps so both stay busy.
    Single-TC chips (v5e / v6e): fold the whole batch onto lanes so the serial
    grid loop and the 5-matmul dependency chain are amortized over wider lanes.
    """
    try:
        kind = jax.devices()[0].device_kind.lower()
    except Exception:  # pragma: no cover - defensive
        kind = ""
    min_steps = 2 if "v7" in kind else 1
    b = N // min_steps if N >= min_steps else 1
    b = max(1, min(b, max(1, max_lanes // HW)))
    while N % b:
        b -= 1
    return b


# ---------------------------------------------------------------------------
# Wrapper: one pallas_call for the whole HEU
# ---------------------------------------------------------------------------

def heu_forward(x_nchw, p, images_per_block=None):
    N, C, H, W = x_nchw.shape
    HW = H * W
    B = images_per_block if images_per_block else _images_per_block(N, HW)
    nb = N // B
    LANES = B * HW
    Cr = p["fc1"].shape[1]

    masks = jnp.asarray(_make_masks(H, W, B))

    # Fold B images onto the lane axis: (N, C, HW) -> (nb, C, B*HW).
    xr = (x_nchw.reshape(nb, B, C, HW)
                .transpose(0, 2, 1, 3)
                .reshape(nb, C, LANES))

    out = pl.pallas_call(
        functools.partial(heu_kernel, H=H, W=W, B=B),
        out_shape=jax.ShapeDtypeStruct((nb, C, LANES), x_nchw.dtype),
        grid=(nb,),
        in_specs=[
            pl.BlockSpec((9, LANES), lambda n: (0, 0)),             # masks: once
            pl.BlockSpec((1, C, LANES), lambda n: (n, 0, 0)),       # input block
            pl.BlockSpec((4, C, 9 * C + 1), lambda n: (0, 0, 0)),   # res convs: once
            pl.BlockSpec((C, 27 * C + 1), lambda n: (0, 0)),        # fused last: once
            pl.BlockSpec((C, Cr), lambda n: (0, 0)),                # SE fc1
            pl.BlockSpec((C, Cr), lambda n: (0, 0)),                # SE fc2
        ],
        out_specs=pl.BlockSpec((1, C, LANES), lambda n: (n, 0, 0)),
        compiler_params=pltpu.CompilerParams(dimension_semantics=("parallel",)),
    )(masks, xr, p["w4"], p["wlast"], p["fc1"], p["fc2"])

    return (out.reshape(nb, C, B, HW)
               .transpose(0, 2, 1, 3)
               .reshape(N, C, H, W))


# ---------------------------------------------------------------------------
# Deterministic synthetic parameters (Conv + BN folded) + packing for the kernel
# ---------------------------------------------------------------------------

def make_params(planes, key):
    keys = iter(jax.random.split(key, 64))
    nxt = lambda: next(keys)

    def conv_bn(cin, cout, eps=1e-3):
        w = 0.15 * jax.random.normal(nxt(), (3, 3, cin, cout), jnp.float32)   # HWIO
        b = 0.05 * jax.random.normal(nxt(), (cout,), jnp.float32)
        gamma = 1.0 + 0.1 * jax.random.normal(nxt(), (cout,), jnp.float32)
        beta = 0.05 * jax.random.normal(nxt(), (cout,), jnp.float32)
        mean = 0.05 * jax.random.normal(nxt(), (cout,), jnp.float32)
        var = 0.5 + 0.25 * jax.random.uniform(nxt(), (cout,), jnp.float32)
        scale = gamma / jnp.sqrt(var + eps)
        # TODO(synk): PyTorch BN in training mode uses batch stats; folded here as
        # inference-mode (running-stat) affine.
        return w * scale[None, None, None, :], (b - mean) * scale + beta

    p = {}
    p["r0w1"], p["r0b1"] = conv_bn(planes, planes)
    p["r0w2"], p["r0b2"] = conv_bn(planes, planes)
    p["r1w1"], p["r1b1"] = conv_bn(planes, planes)
    p["r1w2"], p["r1b2"] = conv_bn(planes, planes)
    p["lw"], p["lb"] = conv_bn(3 * planes, planes)
    cr = max(1, planes // 4)
    # SELayer(planes, reduction=4): bias-free Linear(C -> C/4) / Linear(C/4 -> C)
    # (mmderain SELayer uses bias=False Linears).
    p["fc1"] = 0.3 * jax.random.normal(nxt(), (planes, cr), jnp.float32)
    p["fc2"] = 0.3 * jax.random.normal(nxt(), (planes, cr), jnp.float32)

    # --- pack for the fused kernel -----------------------------------------
    C = planes

    def to_mat(w_hwio):
        # (3,3,Cin,Cout) HWIO -> (Cout, 9*Cin): columns tap-major then input
        # channel, matching the vreg-resident im2col row order in the kernel.
        kh, kw, cin, cout = w_hwio.shape
        return jnp.transpose(w_hwio, (3, 0, 1, 2)).reshape(cout, kh * kw * cin)

    def with_bias(mat, bias):
        # bias column rides the MXU via the patch ones-row.
        return jnp.concatenate([mat, bias[:, None]], axis=1)

    p["w4"] = jnp.stack([
        with_bias(to_mat(p["r0w1"]), p["r0b1"]),
        with_bias(to_mat(p["r0w2"]), p["r0b2"]),
        with_bias(to_mat(p["r1w1"]), p["r1b1"]),
        with_bias(to_mat(p["r1w2"]), p["r1b2"]),
    ], axis=0)                                                    # (4, C, 9C+1)

    lw = p["lw"]
    p["wlast"] = jnp.concatenate([
        to_mat(lw[:, :, 0 * C:1 * C, :]),    # concat slice for x
        to_mat(lw[:, :, 1 * C:2 * C, :]),    # concat slice for out1
        to_mat(lw[:, :, 2 * C:3 * C, :]),    # concat slice for out2
        p["lb"][:, None],
    ], axis=1)                                                    # (C, 27C+1)
    return p


# ---------------------------------------------------------------------------
# Pure-JAX reference (for correctness check)
# ---------------------------------------------------------------------------

def ref_forward(x_nchw, p):
    x = jnp.transpose(x_nchw, (0, 2, 3, 1))                       # NHWC

    def conv(x, w, b):
        y = jax.lax.conv_general_dilated(
            x, w, window_strides=(1, 1), padding="SAME",
            dimension_numbers=("NHWC", "HWIO", "NHWC"))
        return y + b[None, None, None, :]

    def cbr(x, w, b):
        return jnp.maximum(conv(x, w, b), 0.0)

    h = cbr(x, p["r0w1"], p["r0b1"])
    out1 = x + cbr(h, p["r0w2"], p["r0b2"])
    h = cbr(out1, p["r1w1"], p["r1b1"])
    out2 = out1 + cbr(h, p["r1w2"], p["r1b2"])
    cat = jnp.concatenate([x, out1, out2], axis=-1)
    y = conv(cat, p["lw"], p["lb"])
    pooled = jnp.mean(y, axis=(1, 2))                             # (N, C)
    hidden = jnp.maximum(pooled @ p["fc1"], 0.0)                  # (N, Cr)
    gate = jax.nn.sigmoid(hidden @ p["fc2"].T)                    # (N, C)
    out = jnp.maximum(y * gate[:, None, None, :], 0.0) + x
    return jnp.transpose(out, (0, 3, 1, 2))                       # back to NCHW


# ---------------------------------------------------------------------------

if __name__ == "__main__":
    planes = 4
    N, H, W = 2, 16, 16

    key = jax.random.PRNGKey(0)
    kx, kp = jax.random.split(key)
    # PyTorch NCHW input of shape (2, 4, 16, 16).
    x = jax.random.normal(kx, (N, planes, H, W), jnp.float32)
    params = make_params(planes, kp)

    fwd = jax.jit(heu_forward)
    out = jax.block_until_ready(fwd(x, params))
    ref = jax.block_until_ready(ref_forward(x, params))
    np.testing.assert_allclose(np.asarray(out), np.asarray(ref),
                               rtol=2e-3, atol=2e-3)
    print("KERNEL_OK")
</pallas_src>

<mosaic_0001>
module attributes {stable_mosaic.version = 11 : i64} {
  func.func @heu_kernel(%arg0: i32, %arg1: memref<9x512xf32, #tpu.memory_space<vmem>>, %arg2: memref<1x4x512xf32, #tpu.memory_space<vmem>>, %arg3: memref<4x4x37xf32, #tpu.memory_space<vmem>>, %arg4: memref<4x109xf32, #tpu.memory_space<vmem>>, %arg5: memref<4x1xf32, #tpu.memory_space<vmem>>, %arg6: memref<4x1xf32, #tpu.memory_space<vmem>>, %arg7: memref<1x4x512xf32, #tpu.memory_space<vmem>>) attributes {dimension_semantics = [#tpu.dimension_semantics<parallel>], iteration_bounds = array<i64: 1>, scalar_prefetch = 0 : i64, scratch_operands = 0 : i64, tpu.core_type = #tpu.core_type<tc>, window_params = [{pipeline_mode = #tpu.pipeline_mode<synchronous>, transform_indices = @transform_0, window_bounds = array<i64: 9, 512>}, {transform_indices = @transform_1, window_bounds = array<i64: 1, 4, 512>}, {pipeline_mode = #tpu.pipeline_mode<synchronous>, transform_indices = @transform_2, window_bounds = array<i64: 4, 4, 37>}, {pipeline_mode = #tpu.pipeline_mode<synchronous>, transform_indices = @transform_3, window_bounds = array<i64: 4, 109>}, {pipeline_mode = #tpu.pipeline_mode<synchronous>, transform_indices = @transform_4, window_bounds = array<i64: 4, 1>}, {pipeline_mode = #tpu.pipeline_mode<synchronous>, transform_indices = @transform_5, window_bounds = array<i64: 4, 1>}, {transform_indices = @transform_6, window_bounds = array<i64: 1, 4, 512>}]} {
    %c4 = arith.constant 4 : index
    %c0 = arith.constant 0 : index
    %0 = vector.load %arg1[%c4, %c0] : memref<9x512xf32, #tpu.memory_space<vmem>>, vector<1x512xf32>
    %c0_0 = arith.constant 0 : index
    %c0_1 = arith.constant 0 : index
    %c0_2 = arith.constant 0 : index
    %1 = vector.load %arg2[%c0_0, %c0_1, %c0_2] : memref<1x4x512xf32, #tpu.memory_space<vmem>>, vector<1x4x512xf32>
    %2 = vector.shape_cast %1 : vector<1x4x512xf32> to vector<4x512xf32>
    %c0_3 = arith.constant 0 : index
    %c0_4 = arith.constant 0 : index
    %c0_5 = arith.constant 0 : index
    %3 = vector.load %arg3[%c0_3, %c0_4, %c0_5] : memref<4x4x37xf32, #tpu.memory_space<vmem>>, vector<1x4x37xf32>
    %4 = vector.shape_cast %3 : vector<1x4x37xf32> to vector<4x37xf32>
    %c17_i32 = arith.constant 17 : i32
    %5 = tpu.dynamic_rotate %2 by %c17_i32 dim 1 : vector<4x512xf32>, i32 -> vector<4x512xf32>
    %c0_6 = arith.constant 0 : index
    %c0_7 = arith.constant 0 : index
    %6 = vector.load %arg1[%c0_6, %c0_7] : memref<9x512xf32, #tpu.memory_space<vmem>>, vector<1x512xf32>
    %7 = vector.broadcast %6 : vector<1x512xf32> to vector<4x512xf32>
    %8 = arith.mulf %5, %7 : vector<4x512xf32>
    %c16_i32 = arith.constant 16 : i32
    %9 = tpu.dynamic_rotate %2 by %c16_i32 dim 1 : vector<4x512xf32>, i32 -> vector<4x512xf32>
    %c1 = arith.constant 1 : index
    %c0_8 = arith.constant 0 : index
    %10 = vector.load %arg1[%c1, %c0_8] : memref<9x512xf32, #tpu.memory_space<vmem>>, vector<1x512xf32>
    %11 = vector.broadcast %10 : vector<1x512xf32> to vector<4x512xf32>
    %12 = arith.mulf %9, %11 : vector<4x512xf32>
    %c15_i32 = arith.constant 15 : i32
    %13 = tpu.dynamic_rotate %2 by %c15_i32 dim 1 : vector<4x512xf32>, i32 -> vector<4x512xf32>
    %c2 = arith.constant 2 : index
    %c0_9 = arith.constant 0 : index
    %14 = vector.load %arg1[%c2, %c0_9] : memref<9x512xf32, #tpu.memory_space<vmem>>, vector<1x512xf32>
    %15 = vector.broadcast %14 : vector<1x512xf32> to vector<4x512xf32>
    %16 = arith.mulf %13, %15 : vector<4x512xf32>
    %c1_i32 = arith.constant 1 : i32
    %17 = tpu.dynamic_rotate %2 by %c1_i32 dim 1 : vector<4x512xf32>, i32 -> vector<4x512xf32>
    %c3 = arith.constant 3 : index
    %c0_10 = arith.constant 0 : index
    %18 = vector.load %arg1[%c3, %c0_10] : memref<9x512xf32, #tpu.memory_space<vmem>>, vector<1x512xf32>
    %19 = vector.broadcast %18 : vector<1x512xf32> to vector<4x512xf32>
    %20 = arith.mulf %17, %19 : vector<4x512xf32>
    %c511_i32 = arith.constant 511 : i32
    %21 = tpu.dynamic_rotate %2 by %c511_i32 dim 1 : vector<4x512xf32>, i32 -> vector<4x512xf32>
    %c5 = arith.constant 5 : index
    %c0_11 = arith.constant 0 : index
    %22 = vector.load %arg1[%c5, %c0_11] : memref<9x512xf32, #tpu.memory_space<vmem>>, vector<1x512xf32>
    %23 = vector.broadcast %22 : vector<1x512xf32> to vector<4x512xf32>
    %24 = arith.mulf %21, %23 : vector<4x512xf32>
    %c497_i32 = arith.constant 497 : i32
    %25 = tpu.dynamic_rotate %2 by %c497_i32 dim 1 : vector<4x512xf32>, i32 -> vector<4x512xf32>
    %c6 = arith.constant 6 : index
    %c0_12 = arith.constant 0 : index
    %26 = vector.load %arg1[%c6, %c0_12] : memref<9x512xf32, #tpu.memory_space<vmem>>, vector<1x512xf32>
    %27 = vector.broadcast %26 : vector<1x512xf32> to vector<4x512xf32>
    %28 = arith.mulf %25, %27 : vector<4x512xf32>
    %c496_i32 = arith.constant 496 : i32
    %29 = tpu.dynamic_rotate %2 by %c496_i32 dim 1 : vector<4x512xf32>, i32 -> vector<4x512xf32>
    %c7 = arith.constant 7 : index
    %c0_13 = arith.constant 0 : index
    %30 = vector.load %arg1[%c7, %c0_13] : memref<9x512xf32, #tpu.memory_space<vmem>>, vector<1x512xf32>
    %31 = vector.broadcast %30 : vector<1x512xf32> to vector<4x512xf32>
    %32 = arith.mulf %29, %31 : vector<4x512xf32>
    %c495_i32 = arith.constant 495 : i32
    %33 = tpu.dynamic_rotate %2 by %c495_i32 dim 1 : vector<4x512xf32>, i32 -> vector<4x512xf32>
    %c8 = arith.constant 8 : index
    %c0_14 = arith.constant 0 : index
    %34 = vector.load %arg1[%c8, %c0_14] : memref<9x512xf32, #tpu.memory_space<vmem>>, vector<1x512xf32>
    %35 = vector.broadcast %34 : vector<1x512xf32> to vector<4x512xf32>
    %36 = arith.mulf %33, %35 : vector<4x512xf32>
    %37 = tpu.concatenate %8, %12, %16, %20, %2, %24, %28, %32, %36, %0 in 0 : vector<4x512xf32>, vector<4x512xf32>, vector<4x512xf32>, vector<4x512xf32>, vector<4x512xf32>, vector<4x512xf32>, vector<4x512xf32>, vector<4x512xf32>, vector<4x512xf32>, vector<1x512xf32> -> vector<37x512xf32>
    %cst = arith.constant dense<0.000000e+00> : vector<4x512xf32>
    %38 = tpu.matmul %4, %37, %cst {dimension_numbers = #tpu.dot_dimension_numbers<[1], [0], [0], [1], [0, 0, 1, 1], [], []>} : vector<4x37xf32>, vector<37x512xf32>, vector<4x512xf32> -> vector<4x512xf32>
    %cst_15 = arith.constant 0.000000e+00 : f32
    %39 = vector.broadcast %cst_15 : f32 to vector<4x512xf32>
    %40 = arith.maximumf %38, %39 : vector<4x512xf32>
    %c1_16 = arith.constant 1 : index
    %c0_17 = arith.constant 0 : index
    %c0_18 = arith.constant 0 : index
    %41 = vector.load %arg3[%c1_16, %c0_17, %c0_18] : memref<4x4x37xf32, #tpu.memory_space<vmem>>, vector<1x4x37xf32>
    %42 = vector.shape_cast %41 : vector<1x4x37xf32> to vector<4x37xf32>
    %c17_i32_19 = arith.constant 17 : i32
    %43 = tpu.dynamic_rotate %40 by %c17_i32_19 dim 1 : vector<4x512xf32>, i32 -> vector<4x512xf32>
    %c0_20 = arith.constant 0 : index
    %c0_21 = arith.constant 0 : index
    %44 = vector.load %arg1[%c0_20, %c0_21] : memref<9x512xf32, #tpu.memory_space<vmem>>, vector<1x512xf32>
    %45 = vector.broadcast %44 : vector<1x512xf32> to vector<4x512xf32>
    %46 = arith.mulf %43, %45 : vector<4x512xf32>
    %c16_i32_22 = arith.constant 16 : i32
    %47 = tpu.dynamic_rotate %40 by %c16_i32_22 dim 1 : vector<4x512xf32>, i32 -> vector<4x512xf32>
    %c1_23 = arith.constant 1 : index
    %c0_24 = arith.constant 0 : index
    %48 = vector.load %arg1[%c1_23, %c0_24] : memref<9x512xf32, #tpu.memory_space<vmem>>, vector<1x512xf32>
    %49 = vector.broadcast %48 : vector<1x512xf32> to vector<4x512xf32>
    %50 = arith.mulf %47, %49 : vector<4x512xf32>
    %c15_i32_25 = arith.constant 15 : i32
    %51 = tpu.dynamic_rotate %40 by %c15_i32_25 dim 1 : vector<4x512xf32>, i32 -> vector<4x512xf32>
    %c2_26 = arith.constant 2 : index
    %c0_27 = arith.constant 0 : index
    %52 = vector.load %arg1[%c2_26, %c0_27] : memref<9x512xf32, #tpu.memory_space<vmem>>, vector<1x512xf32>
    %53 = vector.broadcast %52 : vector<1x512xf32> to vector<4x512xf32>
    %54 = arith.mulf %51, %53 : vector<4x512xf32>
    %c1_i32_28 = arith.constant 1 : i32
    %55 = tpu.dynamic_rotate %40 by %c1_i32_28 dim 1 : vector<4x512xf32>, i32 -> vector<4x512xf32>
    %c3_29 = arith.constant 3 : index
    %c0_30 = arith.constant 0 : index
    %56 = vector.load %arg1[%c3_29, %c0_30] : memref<9x512xf32, #tpu.memory_space<vmem>>, vector<1x512xf32>
    %57 = vector.broadcast %56 : vector<1x512xf32> to vector<4x512xf32>
    %58 = arith.mulf %55, %57 : vector<4x512xf32>
    %c511_i32_31 = arith.constant 511 : i32
    %59 = tpu.dynamic_rotate %40 by %c511_i32_31 dim 1 : vector<4x512xf32>, i32 -> vector<4x512xf32>
    %c5_32 = arith.constant 5 : index
    %c0_33 = arith.constant 0 : index
    %60 = vector.load %arg1[%c5_32, %c0_33] : memref<9x512xf32, #tpu.memory_space<vmem>>, vector<1x512xf32>
    %61 = vector.broadcast %60 : vector<1x512xf32> to vector<4x512xf32>
    %62 = arith.mulf %59, %61 : vector<4x512xf32>
    %c497_i32_34 = arith.constant 497 : i32
    %63 = tpu.dynamic_rotate %40 by %c497_i32_34 dim 1 : vector<4x512xf32>, i32 -> vector<4x512xf32>
    %c6_35 = arith.constant 6 : index
    %c0_36 = arith.constant 0 : index
    %64 = vector.load %arg1[%c6_35, %c0_36] : memref<9x512xf32, #tpu.memory_space<vmem>>, vector<1x512xf32>
    %65 = vector.broadcast %64 : vector<1x512xf32> to vector<4x512xf32>
    %66 = arith.mulf %63, %65 : vector<4x512xf32>
    %c496_i32_37 = arith.constant 496 : i32
    %67 = tpu.dynamic_rotate %40 by %c496_i32_37 dim 1 : vector<4x512xf32>, i32 -> vector<4x512xf32>
    %c7_38 = arith.constant 7 : index
    %c0_39 = arith.constant 0 : index
    %68 = vector.load %arg1[%c7_38, %c0_39] : memref<9x512xf32, #tpu.memory_space<vmem>>, vector<1x512xf32>
    %69 = vector.broadcast %68 : vector<1x512xf32> to vector<4x512xf32>
    %70 = arith.mulf %67, %69 : vector<4x512xf32>
    %c495_i32_40 = arith.constant 495 : i32
    %71 = tpu.dynamic_rotate %40 by %c495_i32_40 dim 1 : vector<4x512xf32>, i32 -> vector<4x512xf32>
    %c8_41 = arith.constant 8 : index
    %c0_42 = arith.constant 0 : index
    %72 = vector.load %arg1[%c8_41, %c0_42] : memref<9x512xf32, #tpu.memory_space<vmem>>, vector<1x512xf32>
    %73 = vector.broadcast %72 : vector<1x512xf32> to vector<4x512xf32>
    %74 = arith.mulf %71, %73 : vector<4x512xf32>
    %75 = tpu.concatenate %46, %50, %54, %58, %40, %62, %66, %70, %74, %0 in 0 : vector<4x512xf32>, vector<4x512xf32>, vector<4x512xf32>, vector<4x512xf32>, vector<4x512xf32>, vector<4x512xf32>, vector<4x512xf32>, vector<4x512xf32>, vector<4x512xf32>, vector<1x512xf32> -> vector<37x512xf32>
    %cst_43 = arith.constant dense<0.000000e+00> : vector<4x512xf32>
    %76 = tpu.matmul %42, %75, %cst_43 {dimension_numbers = #tpu.dot_dimension_numbers<[1], [0], [0], [1], [0, 0, 1, 1], [], []>} : vector<4x37xf32>, vector<37x512xf32>, vector<4x512xf32> -> vector<4x512xf32>
    %cst_44 = arith.constant 0.000000e+00 : f32
    %77 = vector.broadcast %cst_44 : f32 to vector<4x512xf32>
    %78 = arith.maximumf %76, %77 : vector<4x512xf32>
    %79 = arith.addf %2, %78 : vector<4x512xf32>
    %c2_45 = arith.constant 2 : index
    %c0_46 = arith.constant 0 : index
    %c0_47 = arith.constant 0 : index
    %80 = vector.load %arg3[%c2_45, %c0_46, %c0_47] : memref<4x4x37xf32, #tpu.memory_space<vmem>>, vector<1x4x37xf32>
    %81 = vector.shape_cast %80 : vector<1x4x37xf32> to vector<4x37xf32>
    %c17_i32_48 = arith.constant 17 : i32
    %82 = tpu.dynamic_rotate %79 by %c17_i32_48 dim 1 : vector<4x512xf32>, i32 -> vector<4x512xf32>
    %c0_49 = arith.constant 0 : index
    %c0_50 = arith.constant 0 : index
    %83 = vector.load %arg1[%c0_49, %c0_50] : memref<9x512xf32, #tpu.memory_space<vmem>>, vector<1x512xf32>
    %84 = vector.broadcast %83 : vector<1x512xf32> to vector<4x512xf32>
    %85 = arith.mulf %82, %84 : vector<4x512xf32>
    %c16_i32_51 = arith.constant 16 : i32
    %86 = tpu.dynamic_rotate %79 by %c16_i32_51 dim 1 : vector<4x512xf32>, i32 -> vector<4x512xf32>
    %c1_52 = arith.constant 1 : index
    %c0_53 = arith.constant 0 : index
    %87 = vector.load %arg1[%c1_52, %c0_53] : memref<9x512xf32, #tpu.memory_space<vmem>>, vector<1x512xf32>
    %88 = vector.broadcast %87 : vector<1x512xf32> to vector<4x512xf32>
    %89 = arith.mulf %86, %88 : vector<4x512xf32>
    %c15_i32_54 = arith.constant 15 : i32
    %90 = tpu.dynamic_rotate %79 by %c15_i32_54 dim 1 : vector<4x512xf32>, i32 -> vector<4x512xf32>
    %c2_55 = arith.constant 2 : index
    %c0_56 = arith.constant 0 : index
    %91 = vector.load %arg1[%c2_55, %c0_56] : memref<9x512xf32, #tpu.memory_space<vmem>>, vector<1x512xf32>
    %92 = vector.broadcast %91 : vector<1x512xf32> to vector<4x512xf32>
    %93 = arith.mulf %90, %92 : vector<4x512xf32>
    %c1_i32_57 = arith.constant 1 : i32
    %94 = tpu.dynamic_rotate %79 by %c1_i32_57 dim 1 : vector<4x512xf32>, i32 -> vector<4x512xf32>
    %c3_58 = arith.constant 3 : index
    %c0_59 = arith.constant 0 : index
    %95 = vector.load %arg1[%c3_58, %c0_59] : memref<9x512xf32, #tpu.memory_space<vmem>>, vector<1x512xf32>
    %96 = vector.broadcast %95 : vector<1x512xf32> to vector<4x512xf32>
    %97 = arith.mulf %94, %96 : vector<4x512xf32>
    %c511_i32_60 = arith.constant 511 : i32
    %98 = tpu.dynamic_rotate %79 by %c511_i32_60 dim 1 : vector<4x512xf32>, i32 -> vector<4x512xf32>
    %c5_61 = arith.constant 5 : index
    %c0_62 = arith.constant 0 : index
    %99 = vector.load %arg1[%c5_61, %c0_62] : memref<9x512xf32, #tpu.memory_space<vmem>>, vector<1x512xf32>
    %100 = vector.broadcast %99 : vector<1x512xf32> to vector<4x512xf32>
    %101 = arith.mulf %98, %100 : vector<4x512xf32>
    %c497_i32_63 = arith.constant 497 : i32
    %102 = tpu.dynamic_rotate %79 by %c497_i32_63 dim 1 : vector<4x512xf32>, i32 -> vector<4x512xf32>
    %c6_64 = arith.constant 6 : index
    %c0_65 = arith.constant 0 : index
    %103 = vector.load %arg1[%c6_64, %c0_65] : memref<9x512xf32, #tpu.memory_space<vmem>>, vector<1x512xf32>
    %104 = vector.broadcast %103 : vector<1x512xf32> to vector<4x512xf32>
    %105 = arith.mulf %102, %104 : vector<4x512xf32>
    %c496_i32_66 = arith.constant 496 : i32
    %106 = tpu.dynamic_rotate %79 by %c496_i32_66 dim 1 : vector<4x512xf32>, i32 -> vector<4x512xf32>
    %c7_67 = arith.constant 7 : index
    %c0_68 = arith.constant 0 : index
    %107 = vector.load %arg1[%c7_67, %c0_68] : memref<9x512xf32, #tpu.memory_space<vmem>>, vector<1x512xf32>
    %108 = vector.broadcast %107 : vector<1x512xf32> to vector<4x512xf32>
    %109 = arith.mulf %106, %108 : vector<4x512xf32>
    %c495_i32_69 = arith.constant 495 : i32
    %110 = tpu.dynamic_rotate %79 by %c495_i32_69 dim 1 : vector<4x512xf32>, i32 -> vector<4x512xf32>
    %c8_70 = arith.constant 8 : index
    %c0_71 = arith.constant 0 : index
    %111 = vector.load %arg1[%c8_70, %c0_71] : memref<9x512xf32, #tpu.memory_space<vmem>>, vector<1x512xf32>
    %112 = vector.broadcast %111 : vector<1x512xf32> to vector<4x512xf32>
    %113 = arith.mulf %110, %112 : vector<4x512xf32>
    %114 = tpu.concatenate %85, %89, %93, %97, %79, %101, %105, %109, %113, %0 in 0 : vector<4x512xf32>, vector<4x512xf32>, vector<4x512xf32>, vector<4x512xf32>, vector<4x512xf32>, vector<4x512xf32>, vector<4x512xf32>, vector<4x512xf32>, vector<4x512xf32>, vector<1x512xf32> -> vector<37x512xf32>
    %cst_72 = arith.constant dense<0.000000e+00> : vector<4x512xf32>
    %115 = tpu.matmul %81, %114, %cst_72 {dimension_numbers = #tpu.dot_dimension_numbers<[1], [0], [0], [1], [0, 0, 1, 1], [], []>} : vector<4x37xf32>, vector<37x512xf32>, vector<4x512xf32> -> vector<4x512xf32>
    %cst_73 = arith.constant 0.000000e+00 : f32
    %116 = vector.broadcast %cst_73 : f32 to vector<4x512xf32>
    %117 = arith.maximumf %115, %116 : vector<4x512xf32>
    %c3_74 = arith.constant 3 : index
    %c0_75 = arith.constant 0 : index
    %c0_76 = arith.constant 0 : index
    %118 = vector.load %arg3[%c3_74, %c0_75, %c0_76] : memref<4x4x37xf32, #tpu.memory_space<vmem>>, vector<1x4x37xf32>
    %119 = vector.shape_cast %118 : vector<1x4x37xf32> to vector<4x37xf32>
    %c17_i32_77 = arith.constant 17 : i32
    %120 = tpu.dynamic_rotate %117 by %c17_i32_77 dim 1 : vector<4x512xf32>, i32 -> vector<4x512xf32>
    %c0_78 = arith.constant 0 : index
    %c0_79 = arith.constant 0 : index
    %121 = vector.load %arg1[%c0_78, %c0_79] : memref<9x512xf32, #tpu.memory_space<vmem>>, vector<1x512xf32>
    %122 = vector.broadcast %121 : vector<1x512xf32> to vector<4x512xf32>
    %123 = arith.mulf %120, %122 : vector<4x512xf32>
    %c16_i32_80 = arith.constant 16 : i32
    %124 = tpu.dynamic_rotate %117 by %c16_i32_80 dim 1 : vector<4x512xf32>, i32 -> vector<4x512xf32>
    %c1_81 = arith.constant 1 : index
    %c0_82 = arith.constant 0 : index
    %125 = vector.load %arg1[%c1_81, %c0_82] : memref<9x512xf32, #tpu.memory_space<vmem>>, vector<1x512xf32>
    %126 = vector.broadcast %125 : vector<1x512xf32> to vector<4x512xf32>
    %127 = arith.mulf %124, %126 : vector<4x512xf32>
    %c15_i32_83 = arith.constant 15 : i32
    %128 = tpu.dynamic_rotate %117 by %c15_i32_83 dim 1 : vector<4x512xf32>, i32 -> vector<4x512xf32>
    %c2_84 = arith.constant 2 : index
    %c0_85 = arith.constant 0 : index
    %129 = vector.load %arg1[%c2_84, %c0_85] : memref<9x512xf32, #tpu.memory_space<vmem>>, vector<1x512xf32>
    %130 = vector.broadcast %129 : vector<1x512xf32> to vector<4x512xf32>
    %131 = arith.mulf %128, %130 : vector<4x512xf32>
    %c1_i32_86 = arith.constant 1 : i32
    %132 = tpu.dynamic_rotate %117 by %c1_i32_86 dim 1 : vector<4x512xf32>, i32 -> vector<4x512xf32>
    %c3_87 = arith.constant 3 : index
    %c0_88 = arith.constant 0 : index
    %133 = vector.load %arg1[%c3_87, %c0_88] : memref<9x512xf32, #tpu.memory_space<vmem>>, vector<1x512xf32>
    %134 = vector.broadcast %133 : vector<1x512xf32> to vector<4x512xf32>
    %135 = arith.mulf %132, %134 : vector<4x512xf32>
    %c511_i32_89 = arith.constant 511 : i32
    %136 = tpu.dynamic_rotate %117 by %c511_i32_89 dim 1 : vector<4x512xf32>, i32 -> vector<4x512xf32>
    %c5_90 = arith.constant 5 : index
    %c0_91 = arith.constant 0 : index
    %137 = vector.load %arg1[%c5_90, %c0_91] : memref<9x512xf32, #tpu.memory_space<vmem>>, vector<1x512xf32>
    %138 = vector.broadcast %137 : vector<1x512xf32> to vector<4x512xf32>
    %139 = arith.mulf %136, %138 : vector<4x512xf32>
    %c497_i32_92 = arith.constant 497 : i32
    %140 = tpu.dynamic_rotate %117 by %c497_i32_92 dim 1 : vector<4x512xf32>, i32 -> vector<4x512xf32>
    %c6_93 = arith.constant 6 : index
    %c0_94 = arith.constant 0 : index
    %141 = vector.load %arg1[%c6_93, %c0_94] : memref<9x512xf32, #tpu.memory_space<vmem>>, vector<1x512xf32>
    %142 = vector.broadcast %141 : vector<1x512xf32> to vector<4x512xf32>
    %143 = arith.mulf %140, %142 : vector<4x512xf32>
    %c496_i32_95 = arith.constant 496 : i32
    %144 = tpu.dynamic_rotate %117 by %c496_i32_95 dim 1 : vector<4x512xf32>, i32 -> vector<4x512xf32>
    %c7_96 = arith.constant 7 : index
    %c0_97 = arith.constant 0 : index
    %145 = vector.load %arg1[%c7_96, %c0_97] : memref<9x512xf32, #tpu.memory_space<vmem>>, vector<1x512xf32>
    %146 = vector.broadcast %145 : vector<1x512xf32> to vector<4x512xf32>
    %147 = arith.mulf %144, %146 : vector<4x512xf32>
    %c495_i32_98 = arith.constant 495 : i32
    %148 = tpu.dynamic_rotate %117 by %c495_i32_98 dim 1 : vector<4x512xf32>, i32 -> vector<4x512xf32>
    %c8_99 = arith.constant 8 : index
    %c0_100 = arith.constant 0 : index
    %149 = vector.load %arg1[%c8_99, %c0_100] : memref<9x512xf32, #tpu.memory_space<vmem>>, vector<1x512xf32>
    %150 = vector.broadcast %149 : vector<1x512xf32> to vector<4x512xf32>
    %151 = arith.mulf %148, %150 : vector<4x512xf32>
    %152 = tpu.concatenate %123, %127, %131, %135, %117, %139, %143, %147, %151, %0 in 0 : vector<4x512xf32>, vector<4x512xf32>, vector<4x512xf32>, vector<4x512xf32>, vector<4x512xf32>, vector<4x512xf32>, vector<4x512xf32>, vector<4x512xf32>, vector<4x512xf32>, vector<1x512xf32> -> vector<37x512xf32>
    %cst_101 = arith.constant dense<0.000000e+00> : vector<4x512xf32>
    %153 = tpu.matmul %119, %152, %cst_101 {dimension_numbers = #tpu.dot_dimension_numbers<[1], [0], [0], [1], [0, 0, 1, 1], [], []>} : vector<4x37xf32>, vector<37x512xf32>, vector<4x512xf32> -> vector<4x512xf32>
    %cst_102 = arith.constant 0.000000e+00 : f32
    %154 = vector.broadcast %cst_102 : f32 to vector<4x512xf32>
    %155 = arith.maximumf %153, %154 : vector<4x512xf32>
    %156 = arith.addf %79, %155 : vector<4x512xf32>
    %c17_i32_103 = arith.constant 17 : i32
    %157 = tpu.dynamic_rotate %2 by %c17_i32_103 dim 1 : vector<4x512xf32>, i32 -> vector<4x512xf32>
    %c0_104 = arith.constant 0 : index
    %c0_105 = arith.constant 0 : index
    %158 = vector.load %arg1[%c0_104, %c0_105] : memref<9x512xf32, #tpu.memory_space<vmem>>, vector<1x512xf32>
    %159 = vector.broadcast %158 : vector<1x512xf32> to vector<4x512xf32>
    %160 = arith.mulf %157, %159 : vector<4x512xf32>
    %c16_i32_106 = arith.constant 16 : i32
    %161 = tpu.dynamic_rotate %2 by %c16_i32_106 dim 1 : vector<4x512xf32>, i32 -> vector<4x512xf32>
    %c1_107 = arith.constant 1 : index
    %c0_108 = arith.constant 0 : index
    %162 = vector.load %arg1[%c1_107, %c0_108] : memref<9x512xf32, #tpu.memory_space<vmem>>, vector<1x512xf32>
    %163 = vector.broadcast %162 : vector<1x512xf32> to vector<4x512xf32>
    %164 = arith.mulf %161, %163 : vector<4x512xf32>
    %c15_i32_109 = arith.constant 15 : i32
    %165 = tpu.dynamic_rotate %2 by %c15_i32_109 dim 1 : vector<4x512xf32>, i32 -> vector<4x512xf32>
    %c2_110 = arith.constant 2 : index
    %c0_111 = arith.constant 0 : index
    %166 = vector.load %arg1[%c2_110, %c0_111] : memref<9x512xf32, #tpu.memory_space<vmem>>, vector<1x512xf32>
    %167 = vector.broadcast %166 : vector<1x512xf32> to vector<4x512xf32>
    %168 = arith.mulf %165, %167 : vector<4x512xf32>
    %c1_i32_112 = arith.constant 1 : i32
    %169 = tpu.dynamic_rotate %2 by %c1_i32_112 dim 1 : vector<4x512xf32>, i32 -> vector<4x512xf32>
    %c3_113 = arith.constant 3 : index
    %c0_114 = arith.constant 0 : index
    %170 = vector.load %arg1[%c3_113, %c0_114] : memref<9x512xf32, #tpu.memory_space<vmem>>, vector<1x512xf32>
    %171 = vector.broadcast %170 : vector<1x512xf32> to vector<4x512xf32>
    %172 = arith.mulf %169, %171 : vector<4x512xf32>
    %c511_i32_115 = arith.constant 511 : i32
    %173 = tpu.dynamic_rotate %2 by %c511_i32_115 dim 1 : vector<4x512xf32>, i32 -> vector<4x512xf32>
    %c5_116 = arith.constant 5 : index
    %c0_117 = arith.constant 0 : index
    %174 = vector.load %arg1[%c5_116, %c0_117] : memref<9x512xf32, #tpu.memory_space<vmem>>, vector<1x512xf32>
    %175 = vector.broadcast %174 : vector<1x512xf32> to vector<4x512xf32>
    %176 = arith.mulf %173, %175 : vector<4x512xf32>
    %c497_i32_118 = arith.constant 497 : i32
    %177 = tpu.dynamic_rotate %2 by %c497_i32_118 dim 1 : vector<4x512xf32>, i32 -> vector<4x512xf32>
    %c6_119 = arith.constant 6 : index
    %c0_120 = arith.constant 0 : index
    %178 = vector.load %arg1[%c6_119, %c0_120] : memref<9x512xf32, #tpu.memory_space<vmem>>, vector<1x512xf32>
    %179 = vector.broadcast %178 : vector<1x512xf32> to vector<4x512xf32>
    %180 = arith.mulf %177, %179 : vector<4x512xf32>
    %c496_i32_121 = arith.constant 496 : i32
    %181 = tpu.dynamic_rotate %2 by %c496_i32_121 dim 1 : vector<4x512xf32>, i32 -> vector<4x512xf32>
    %c7_122 = arith.constant 7 : index
    %c0_123 = arith.constant 0 : index
    %182 = vector.load %arg1[%c7_122, %c0_123] : memref<9x512xf32, #tpu.memory_space<vmem>>, vector<1x512xf32>
    %183 = vector.broadcast %182 : vector<1x512xf32> to vector<4x512xf32>
    %184 = arith.mulf %181, %183 : vector<4x512xf32>
    %c495_i32_124 = arith.constant 495 : i32
    %185 = tpu.dynamic_rotate %2 by %c495_i32_124 dim 1 : vector<4x512xf32>, i32 -> vector<4x512xf32>
    %c8_125 = arith.constant 8 : index
    %c0_126 = arith.constant 0 : index
    %186 = vector.load %arg1[%c8_125, %c0_126] : memref<9x512xf32, #tpu.memory_space<vmem>>, vector<1x512xf32>
    %187 = vector.broadcast %186 : vector<1x512xf32> to vector<4x512xf32>
    %188 = arith.mulf %185, %187 : vector<4x512xf32>
    %c17_i32_127 = arith.constant 17 : i32
    %189 = tpu.dynamic_rotate %79 by %c17_i32_127 dim 1 : vector<4x512xf32>, i32 -> vector<4x512xf32>
    %c0_128 = arith.constant 0 : index
    %c0_129 = arith.constant 0 : index
    %190 = vector.load %arg1[%c0_128, %c0_129] : memref<9x512xf32, #tpu.memory_space<vmem>>, vector<1x512xf32>
    %191 = vector.broadcast %190 : vector<1x512xf32> to vector<4x512xf32>
    %192 = arith.mulf %189, %191 : vector<4x512xf32>
    %c16_i32_130 = arith.constant 16 : i32
    %193 = tpu.dynamic_rotate %79 by %c16_i32_130 dim 1 : vector<4x512xf32>, i32 -> vector<4x512xf32>
    %c1_131 = arith.constant 1 : index
    %c0_132 = arith.constant 0 : index
    %194 = vector.load %arg1[%c1_131, %c0_132] : memref<9x512xf32, #tpu.memory_space<vmem>>, vector<1x512xf32>
    %195 = vector.broadcast %194 : vector<1x512xf32> to vector<4x512xf32>
    %196 = arith.mulf %193, %195 : vector<4x512xf32>
    %c15_i32_133 = arith.constant 15 : i32
    %197 = tpu.dynamic_rotate %79 by %c15_i32_133 dim 1 : vector<4x512xf32>, i32 -> vector<4x512xf32>
    %c2_134 = arith.constant 2 : index
    %c0_135 = arith.constant 0 : index
    %198 = vector.load %arg1[%c2_134, %c0_135] : memref<9x512xf32, #tpu.memory_space<vmem>>, vector<1x512xf32>
    %199 = vector.broadcast %198 : vector<1x512xf32> to vector<4x512xf32>
    %200 = arith.mulf %197, %199 : vector<4x512xf32>
    %c1_i32_136 = arith.constant 1 : i32
    %201 = tpu.dynamic_rotate %79 by %c1_i32_136 dim 1 : vector<4x512xf32>, i32 -> vector<4x512xf32>
    %c3_137 = arith.constant 3 : index
    %c0_138 = arith.constant 0 : index
    %202 = vector.load %arg1[%c3_137, %c0_138] : memref<9x512xf32, #tpu.memory_space<vmem>>, vector<1x512xf32>
    %203 = vector.broadcast %202 : vector<1x512xf32> to vector<4x512xf32>
    %204 = arith.mulf %201, %203 : vector<4x512xf32>
    %c511_i32_139 = arith.constant 511 : i32
    %205 = tpu.dynamic_rotate %79 by %c511_i32_139 dim 1 : vector<4x512xf32>, i32 -> vector<4x512xf32>
    %c5_140 = arith.constant 5 : index
    %c0_141 = arith.constant 0 : index
    %206 = vector.load %arg1[%c5_140, %c0_141] : memref<9x512xf32, #tpu.memory_space<vmem>>, vector<1x512xf32>
    %207 = vector.broadcast %206 : vector<1x512xf32> to vector<4x512xf32>
    %208 = arith.mulf %205, %207 : vector<4x512xf32>
    %c497_i32_142 = arith.constant 497 : i32
    %209 = tpu.dynamic_rotate %79 by %c497_i32_142 dim 1 : vector<4x512xf32>, i32 -> vector<4x512xf32>
    %c6_143 = arith.constant 6 : index
    %c0_144 = arith.constant 0 : index
    %210 = vector.load %arg1[%c6_143, %c0_144] : memref<9x512xf32, #tpu.memory_space<vmem>>, vector<1x512xf32>
    %211 = vector.broadcast %210 : vector<1x512xf32> to vector<4x512xf32>
    %212 = arith.mulf %209, %211 : vector<4x512xf32>
    %c496_i32_145 = arith.constant 496 : i32
    %213 = tpu.dynamic_rotate %79 by %c496_i32_145 dim 1 : vector<4x512xf32>, i32 -> vector<4x512xf32>
    %c7_146 = arith.constant 7 : index
    %c0_147 = arith.constant 0 : index
    %214 = vector.load %arg1[%c7_146, %c0_147] : memref<9x512xf32, #tpu.memory_space<vmem>>, vector<1x512xf32>
    %215 = vector.broadcast %214 : vector<1x512xf32> to vector<4x512xf32>
    %216 = arith.mulf %213, %215 : vector<4x512xf32>
    %c495_i32_148 = arith.constant 495 : i32
    %217 = tpu.dynamic_rotate %79 by %c495_i32_148 dim 1 : vector<4x512xf32>, i32 -> vector<4x512xf32>
    %c8_149 = arith.constant 8 : index
    %c0_150 = arith.constant 0 : index
    %218 = vector.load %arg1[%c8_149, %c0_150] : memref<9x512xf32, #tpu.memory_space<vmem>>, vector<1x512xf32>
    %219 = vector.broadcast %218 : vector<1x512xf32> to vector<4x512xf32>
    %220 = arith.mulf %217, %219 : vector<4x512xf32>
    %c17_i32_151 = arith.constant 17 : i32
    %221 = tpu.dynamic_rotate %156 by %c17_i32_151 dim 1 : vector<4x512xf32>, i32 -> vector<4x512xf32>
    %c0_152 = arith.constant 0 : index
    %c0_153 = arith.constant 0 : index
    %222 = vector.load %arg1[%c0_152, %c0_153] : memref<9x512xf32, #tpu.memory_space<vmem>>, vector<1x512xf32>
    %223 = vector.broadcast %222 : vector<1x512xf32> to vector<4x512xf32>
    %224 = arith.mulf %221, %223 : vector<4x512xf32>
    %c16_i32_154 = arith.constant 16 : i32
    %225 = tpu.dynamic_rotate %156 by %c16_i32_154 dim 1 : vector<4x512xf32>, i32 -> vector<4x512xf32>
    %c1_155 = arith.constant 1 : index
    %c0_156 = arith.constant 0 : index
    %226 = vector.load %arg1[%c1_155, %c0_156] : memref<9x512xf32, #tpu.memory_space<vmem>>, vector<1x512xf32>
    %227 = vector.broadcast %226 : vector<1x512xf32> to vector<4x512xf32>
    %228 = arith.mulf %225, %227 : vector<4x512xf32>
    %c15_i32_157 = arith.constant 15 : i32
    %229 = tpu.dynamic_rotate %156 by %c15_i32_157 dim 1 : vector<4x512xf32>, i32 -> vector<4x512xf32>
    %c2_158 = arith.constant 2 : index
    %c0_159 = arith.constant 0 : index
    %230 = vector.load %arg1[%c2_158, %c0_159] : memref<9x512xf32, #tpu.memory_space<vmem>>, vector<1x512xf32>
    %231 = vector.broadcast %230 : vector<1x512xf32> to vector<4x512xf32>
    %232 = arith.mulf %229, %231 : vector<4x512xf32>
    %c1_i32_160 = arith.constant 1 : i32
    %233 = tpu.dynamic_rotate %156 by %c1_i32_160 dim 1 : vector<4x512xf32>, i32 -> vector<4x512xf32>
    %c3_161 = arith.constant 3 : index
    %c0_162 = arith.constant 0 : index
    %234 = vector.load %arg1[%c3_161, %c0_162] : memref<9x512xf32, #tpu.memory_space<vmem>>, vector<1x512xf32>
    %235 = vector.broadcast %234 : vector<1x512xf32> to vector<4x512xf32>
    %236 = arith.mulf %233, %235 : vector<4x512xf32>
    %c511_i32_163 = arith.constant 511 : i32
    %237 = tpu.dynamic_rotate %156 by %c511_i32_163 dim 1 : vector<4x512xf32>, i32 -> vector<4x512xf32>
    %c5_164 = arith.constant 5 : index
    %c0_165 = arith.constant 0 : index
    %238 = vector.load %arg1[%c5_164, %c0_165] : memref<9x512xf32, #tpu.memory_space<vmem>>, vector<1x512xf32>
    %239 = vector.broadcast %238 : vector<1x512xf32> to vector<4x512xf32>
    %240 = arith.mulf %237, %239 : vector<4x512xf32>
    %c497_i32_166 = arith.constant 497 : i32
    %241 = tpu.dynamic_rotate %156 by %c497_i32_166 dim 1 : vector<4x512xf32>, i32 -> vector<4x512xf32>
    %c6_167 = arith.constant 6 : index
    %c0_168 = arith.constant 0 : index
    %242 = vector.load %arg1[%c6_167, %c0_168] : memref<9x512xf32, #tpu.memory_space<vmem>>, vector<1x512xf32>
    %243 = vector.broadcast %242 : vector<1x512xf32> to vector<4x512xf32>
    %244 = arith.mulf %241, %243 : vector<4x512xf32>
    %c496_i32_169 = arith.constant 496 : i32
    %245 = tpu.dynamic_rotate %156 by %c496_i32_169 dim 1 : vector<4x512xf32>, i32 -> vector<4x512xf32>
    %c7_170 = arith.constant 7 : index
    %c0_171 = arith.constant 0 : index
    %246 = vector.load %arg1[%c7_170, %c0_171] : memref<9x512xf32, #tpu.memory_space<vmem>>, vector<1x512xf32>
    %247 = vector.broadcast %246 : vector<1x512xf32> to vector<4x512xf32>
    %248 = arith.mulf %245, %247 : vector<4x512xf32>
    %c495_i32_172 = arith.constant 495 : i32
    %249 = tpu.dynamic_rotate %156 by %c495_i32_172 dim 1 : vector<4x512xf32>, i32 -> vector<4x512xf32>
    %c8_173 = arith.constant 8 : index
    %c0_174 = arith.constant 0 : index
    %250 = vector.load %arg1[%c8_173, %c0_174] : memref<9x512xf32, #tpu.memory_space<vmem>>, vector<1x512xf32>
    %251 = vector.broadcast %250 : vector<1x512xf32> to vector<4x512xf32>
    %252 = arith.mulf %249, %251 : vector<4x512xf32>
    %253 = tpu.concatenate %160, %164, %168, %172, %2, %176, %180, %184, %188, %192, %196, %200, %204, %79, %208, %212 in 0 : vector<4x512xf32>, vector<4x512xf32>, vector<4x512xf32>, vector<4x512xf32>, vector<4x512xf32>, vector<4x512xf32>, vector<4x512xf32>, vector<4x512xf32>, vector<4x512xf32>, vector<4x512xf32>, vector<4x512xf32>, vector<4x512xf32>, vector<4x512xf32>, vector<4x512xf32>, vector<4x512xf32>, vector<4x512xf32> -> vector<64x512xf32>
    %254 = tpu.concatenate %216, %220, %224, %228, %232, %236, %156, %240, %244, %248, %252, %0 in 0 : vector<4x512xf32>, vector<4x512xf32>, vector<4x512xf32>, vector<4x512xf32>, vector<4x512xf32>, vector<4x512xf32>, vector<4x512xf32>, vector<4x512xf32>, vector<4x512xf32>, vector<4x512xf32>, vector<4x512xf32>, vector<1x512xf32> -> vector<45x512xf32>
    %255 = tpu.concatenate %253, %254 in 0 : vector<64x512xf32>, vector<45x512xf32> -> vector<109x512xf32>
    %c0_175 = arith.constant 0 : index
    %c0_176 = arith.constant 0 : index
    %256 = vector.load %arg4[%c0_175, %c0_176] : memref<4x109xf32, #tpu.memory_space<vmem>>, vector<4x109xf32>
    %cst_177 = arith.constant dense<0.000000e+00> : vector<4x512xf32>
    %257 = tpu.matmul %256, %255, %cst_177 {dimension_numbers = #tpu.dot_dimension_numbers<[1], [0], [0], [1], [0, 0, 1, 1], [], []>} : vector<4x109xf32>, vector<109x512xf32>, vector<4x512xf32> -> vector<4x512xf32>
    %258 = vector.extract_strided_slice %257 {offsets = [0, 0], sizes = [4, 256], strides = [1, 1]} : vector<4x512xf32> to vector<4x256xf32>
    %259 = vector.extract_strided_slice %2 {offsets = [0, 0], sizes = [4, 256], strides = [1, 1]} : vector<4x512xf32> to vector<4x256xf32>
    %cst_178 = arith.constant dense<0.000000e+00> : vector<4xf32>
    %260 = vector.multi_reduction <add>, %258, %cst_178 [1] : vector<4x256xf32> to vector<4xf32>
    %261 = vector.shape_cast %260 : vector<4xf32> to vector<4x1xf32>
    %cst_179 = arith.constant 2.560000e+02 : f32
    %262 = vector.broadcast %cst_179 : f32 to vector<4x1xf32>
    %263 = arith.divf %261, %262 : vector<4x1xf32>
    %c0_180 = arith.constant 0 : index
    %c0_181 = arith.constant 0 : index
    %264 = vector.load %arg5[%c0_180, %c0_181] : memref<4x1xf32, #tpu.memory_space<vmem>>, vector<4x1xf32>
    %265 = arith.mulf %263, %264 : vector<4x1xf32>
    %cst_182 = arith.constant dense<0.000000e+00> : vector<1xf32>
    %266 = vector.multi_reduction <add>, %265, %cst_182 [0] : vector<4x1xf32> to vector<1xf32>
    %267 = vector.shape_cast %266 : vector<1xf32> to vector<1x1xf32>
    %cst_183 = arith.constant 0.000000e+00 : f32
    %268 = vector.broadcast %cst_183 : f32 to vector<1x1xf32>
    %269 = arith.maximumf %267, %268 : vector<1x1xf32>
    %c0_184 = arith.constant 0 : index
    %c0_185 = arith.constant 0 : index
    %270 = vector.load %arg6[%c0_184, %c0_185] : memref<4x1xf32, #tpu.memory_space<vmem>>, vector<4x1xf32>
    %271 = vector.broadcast %269 : vector<1x1xf32> to vector<4x1xf32>
    %272 = arith.mulf %270, %271 : vector<4x1xf32>
    %cst_186 = arith.constant dense<0.000000e+00> : vector<4xf32>
    %273 = vector.multi_reduction <add>, %272, %cst_186 [1] : vector<4x1xf32> to vector<4xf32>
    %274 = vector.shape_cast %273 : vector<4xf32> to vector<4x1xf32>
    %275 = arith.negf %274 : vector<4x1xf32>
    %276 = math.exp %275 : vector<4x1xf32>
    %cst_187 = arith.constant 1.000000e+00 : f32
    %277 = vector.broadcast %cst_187 : f32 to vector<4x1xf32>
    %278 = arith.addf %277, %276 : vector<4x1xf32>
    %279 = arith.divf %277, %278 : vector<4x1xf32>
    %280 = vector.broadcast %279 : vector<4x1xf32> to vector<4x256xf32>
    %281 = arith.mulf %258, %280 : vector<4x256xf32>
    %cst_188 = arith.constant 0.000000e+00 : f32
    %282 = vector.broadcast %cst_188 : f32 to vector<4x256xf32>
    %283 = arith.maximumf %281, %282 : vector<4x256xf32>
    %284 = arith.addf %283, %259 : vector<4x256xf32>
    %c0_189 = arith.constant 0 : index
    %c0_190 = arith.constant 0 : index
    %c0_191 = arith.constant 0 : index
    %285 = vector.load %arg7[%c0_189, %c0_190, %c0_191] : memref<1x4x512xf32, #tpu.memory_space<vmem>>, vector<1x4x256xf32>
    %286 = vector.shape_cast %285 : vector<1x4x256xf32> to vector<4x256xf32>
    %287 = vector.shape_cast %284 : vector<4x256xf32> to vector<1x4x256xf32>
    tpu.vector_store %arg7[%c0_189, %c0_190, %c0_191], %287 {strides = array<i32>} : memref<1x4x512xf32, #tpu.memory_space<vmem>>, vector<1x4x256xf32>,
    %288 = vector.extract_strided_slice %257 {offsets = [0, 256], sizes = [4, 256], strides = [1, 1]} : vector<4x512xf32> to vector<4x256xf32>
    %289 = vector.extract_strided_slice %2 {offsets = [0, 256], sizes = [4, 256], strides = [1, 1]} : vector<4x512xf32> to vector<4x256xf32>
    %cst_192 = arith.constant dense<0.000000e+00> : vector<4xf32>
    %290 = vector.multi_reduction <add>, %288, %cst_192 [1] : vector<4x256xf32> to vector<4xf32>
    %291 = vector.shape_cast %290 : vector<4xf32> to vector<4x1xf32>
    %cst_193 = arith.constant 2.560000e+02 : f32
    %292 = vector.broadcast %cst_193 : f32 to vector<4x1xf32>
    %293 = arith.divf %291, %292 : vector<4x1xf32>
    %c0_194 = arith.constant 0 : index
    %c0_195 = arith.constant 0 : index
    %294 = vector.load %arg5[%c0_194, %c0_195] : memref<4x1xf32, #tpu.memory_space<vmem>>, vector<4x1xf32>
    %295 = arith.mulf %293, %294 : vector<4x1xf32>
    %cst_196 = arith.constant dense<0.000000e+00> : vector<1xf32>
    %296 = vector.multi_reduction <add>, %295, %cst_196 [0] : vector<4x1xf32> to vector<1xf32>
    %297 = vector.shape_cast %296 : vector<1xf32> to vector<1x1xf32>
    %cst_197 = arith.constant 0.000000e+00 : f32
    %298 = vector.broadcast %cst_197 : f32 to vector<1x1xf32>
    %299 = arith.maximumf %297, %298 : vector<1x1xf32>
    %c0_198 = arith.constant 0 : index
    %c0_199 = arith.constant 0 : index
    %300 = vector.load %arg6[%c0_198, %c0_199] : memref<4x1xf32, #tpu.memory_space<vmem>>, vector<4x1xf32>
    %301 = vector.broadcast %299 : vector<1x1xf32> to vector<4x1xf32>
    %302 = arith.mulf %300, %301 : vector<4x1xf32>
    %cst_200 = arith.constant dense<0.000000e+00> : vector<4xf32>
    %303 = vector.multi_reduction <add>, %302, %cst_200 [1] : vector<4x1xf32> to vector<4xf32>
    %304 = vector.shape_cast %303 : vector<4xf32> to vector<4x1xf32>
    %305 = arith.negf %304 : vector<4x1xf32>
    %306 = math.exp %305 : vector<4x1xf32>
    %cst_201 = arith.constant 1.000000e+00 : f32
    %307 = vector.broadcast %cst_201 : f32 to vector<4x1xf32>
    %308 = arith.addf %307, %306 : vector<4x1xf32>
    %309 = arith.divf %307, %308 : vector<4x1xf32>
    %310 = vector.broadcast %309 : vector<4x1xf32> to vector<4x256xf32>
    %311 = arith.mulf %288, %310 : vector<4x256xf32>
    %cst_202 = arith.constant 0.000000e+00 : f32
    %312 = vector.broadcast %cst_202 : f32 to vector<4x256xf32>
    %313 = arith.maximumf %311, %312 : vector<4x256xf32>
    %314 = arith.addf %313, %289 : vector<4x256xf32>
    %c0_203 = arith.constant 0 : index
    %c0_204 = arith.constant 0 : index
    %c256 = arith.constant 256 : index
    %315 = vector.load %arg7[%c0_203, %c0_204, %c256] : memref<1x4x512xf32, #tpu.memory_space<vmem>>, vector<1x4x256xf32>
    %316 = vector.shape_cast %315 : vector<1x4x256xf32> to vector<4x256xf32>
    %317 = vector.shape_cast %314 : vector<4x256xf32> to vector<1x4x256xf32>
    tpu.vector_store %arg7[%c0_203, %c0_204, %c256], %317 {strides = array<i32>} : memref<1x4x512xf32, #tpu.memory_space<vmem>>, vector<1x4x256xf32>,
    return
  }
  func.func @transform_0(%arg0: i32) -> (i32, i32) {
    %c0_i32 = arith.constant 0 : i32
    %c0_i32_0 = arith.constant 0 : i32
    %c0_i32_1 = arith.constant 0 : i32
    return %c0_i32, %c0_i32_0 : i32, i32
  }
  func.func @transform_1(%arg0: i32) -> (i32, i32, i32) {
    %c0_i32 = arith.constant 0 : i32
    %c0_i32_0 = arith.constant 0 : i32
    %c0_i32_1 = arith.constant 0 : i32
    return %arg0, %c0_i32, %c0_i32_0 : i32, i32, i32
  }
  func.func @transform_2(%arg0: i32) -> (i32, i32, i32) {
    %c0_i32 = arith.constant 0 : i32
    %c0_i32_0 = arith.constant 0 : i32
    %c0_i32_1 = arith.constant 0 : i32
    %c0_i32_2 = arith.constant 0 : i32
    return %c0_i32, %c0_i32_0, %c0_i32_1 : i32, i32, i32
  }
  func.func @transform_3(%arg0: i32) -> (i32, i32) {
    %c0_i32 = arith.constant 0 : i32
    %c0_i32_0 = arith.constant 0 : i32
    %c0_i32_1 = arith.constant 0 : i32
    return %c0_i32, %c0_i32_0 : i32, i32
  }
  func.func @transform_4(%arg0: i32) -> (i32, i32) {
    %c0_i32 = arith.constant 0 : i32
    %c0_i32_0 = arith.constant 0 : i32
    %c0_i32_1 = arith.constant 0 : i32
    return %c0_i32, %c0_i32_0 : i32, i32
  }
  func.func @transform_5(%arg0: i32) -> (i32, i32) {
    %c0_i32 = arith.constant 0 : i32
    %c0_i32_0 = arith.constant 0 : i32
    %c0_i32_1 = arith.constant 0 : i32
    return %c0_i32, %c0_i32_0 : i32, i32
  }
  func.func @transform_6(%arg0: i32) -> (i32, i32, i32) {
    %c0_i32 = arith.constant 0 : i32
    %c0_i32_0 = arith.constant 0 : i32
    %c0_i32_1 = arith.constant 0 : i32
    return %arg0, %c0_i32, %c0_i32_0 : i32, i32, i32
  }
}

</mosaic_0001>

<bundles_post_ra>
// kernel: heu_forward.1
= control target key start
LH: loop header
LB: loop body
LE: loop exit
PB: predicated region body
PF: predicated region fallthrough
CT: control target
= control target key end

     0   :  { %s2424_s25 = smov 16   ;;  %s2425_s26 = smov 1   ;;  %v3930_v4 = vmov 0.0   ;;  %v42_v7 = vlaneseq  ;;  %vm424_vm4 = vcmask 1043456   ;;  %vm449_vm9 = vcmask 1044480   ;;  %s3923_s1 = inlined_call_operand.vmem [shape: f32[1,4,512], index: 1, kind: input, shape index: {}]   ;;  %s3924_s0 = inlined_call_operand.vmem [shape: f32[9,512], index: 0, kind: input, shape index: {}]   ;;  %s3925_s2 = inlined_call_operand.vmem [shape: f32[4,4,37], index: 2, kind: input, shape index: {}]   ;;  %s3926_s3 = inlined_call_operand.vmem [shape: f32[4,109], index: 3, kind: input, shape index: {}]   ;;  %s3927_s4 = inlined_call_operand.vmem [shape: f32[4,1], index: 4, kind: input, shape index: {}]   ;;  %s3928_s5 = inlined_call_operand.vmem [shape: f32[4,1], index: 5, kind: input, shape index: {}]   ;;  %s3929_s6 = inlined_call_operand.vmem [shape: f32[1,4,512], index: 6, kind: output, shape index: {}]  }
   0x1   :  { %v2473_v0 = vld [vmem:[%s3923_s1 + $0x8] sm:$0xff]  ;;  %v2478_v1 = vld [vmem:[%s3923_s1] sm:$0xff]  ;;  %s2426_s27 = smov 17   ;;  %s2427_s28 = smov 15   ;;  %526 = vmatprep.mubr.f32.mxu0 %v3930_v4  ;;  %597 = vmatprep.mubr.f32.mxu1 %v3930_v4  ;;  %vm445_vm10 = vcmask 302080   ;;  %vm2433_vm11 = vmmov 1  }
   0x2   :  { %3996 = vst [vmem:[#allocation2_spill] sm:$0xff] %v2473_v0  ;;  %3997 = vst [vmem:[#allocation3_spill] sm:$0xff] %v2478_v1  ;;  %79 = vrot.lane.b32.xlu1 %v2473_v0, %s2424_s25  ;;  %75 = vrot.lane.b32.xlu0 %v2478_v1, %s2424_s25  ;;  %v2486_v2 = vcombine.high %v2473_v0, %v2473_v0  ;;  %v2490_v3 = vcombine.high %v2478_v1, %v2478_v1  ;;  %s2428_s29 = smov 127   ;;  %s2429_s30 = smov 112   ;;  %v52_v10 = vshrl.u32 %v42_v7, 7  ;;  %vm1986_vm13 = vcmask 891904  }
   0x3   :  { %s2430_s7 = smov 113   ;;  %s2432_s8 = smov 111   ;;  %v2554_v13 = vand.u32 127, %v42_v7  ;;  %v2233_v18 = vld [vmem:[%s3924_s0 + $0x1] ss:$8 sm:$0xf]  ;;  %vm3871_vm12 = vmpackc.low %vm449_vm9, %vm2433_vm11 }
   0x4   :  { %3998 = vst [vmem:[#allocation4_spill] sm:$0xff] %v2486_v2  ;;  %3999 = vst [vmem:[#allocation5_spill] sm:$0xff] %v2490_v3  ;;  %v2556_v14 = vsub.s32 0, %v52_v10  ;;  %v2558_v15 = vsub.s32 3, %v52_v10  ;;  %v2563_v19 = vsub.s32 1, %v52_v10  ;;  %v2566_v20 = vsub.s32 2, %v52_v10 }
   0x5   :  { %vm44_vm0 = vcmp.lt.s32.totalorder %v2554_v13, 17  ;;  %vm83_vm1 = vcmp.lt.s32.totalorder %v2554_v13, 16  ;;  %vm123_vm2 = vcmp.lt.s32.totalorder %v2554_v13, 15  ;;  %vm163_vm3 = vcmp.lt.s32.totalorder %v2554_v13, 1 }
   0x6   :  { %81 = vrot.lane.b32.xlu1 %v2486_v2, %s2424_s25  ;;  %77 = vrot.lane.b32.xlu0 %v2490_v3, %s2424_s25  ;;  %v2235_v21 = vld [vmem:[%s3924_s0 + $0x3] ss:$8 sm:$0xf]  ;;  %v2575_v22 = vrot.slane %v2233_v18, %v2556_v14  ;;  %v2578_v23 = vrot.slane %v2233_v18, %v2558_v15  ;;  %v49_v28 = vld [vmem:[%s3924_s0] ss:$8 sm:$0xf]  ;;  %v2590_v29 = vrot.slane %v2233_v18, %v2563_v19 }
   0x7   :  { %v2581_v24 = vrot.slane %v2235_v21, %v2556_v14  ;;  %v2584_v25 = vrot.slane %v2235_v21, %v2558_v15  ;;  %v2593_v30 = vrot.slane %v49_v28, %v2556_v14  ;;  %v2596_v31 = vrot.slane %v49_v28, %v2558_v15  ;;  %v2234_v32 = vld [vmem:[%s3924_s0 + $0x2] ss:$8 sm:$0xf] }
   0x8   :  { %4000 = vst [vmem:[#allocation6_spill] sm:$0xff] %v2575_v22  ;;  %4001 = vst [vmem:[#allocation7_spill] sm:$0xff] %v2578_v23  ;;  %v2606_v35 = vrot.slane %v2233_v18, %v2566_v20  ;;  %v2609_v36 = vrot.slane %v2235_v21, %v2563_v19  ;;  %v2616_v39 = vrot.slane %v2235_v21, %v2566_v20  ;;  %vm203_vm5 = vcmp.lt.s32.totalorder %v2554_v13, 127 }
   0x9   :  { %4002 = vst [vmem:[#allocation8_spill] sm:$0xff] %v2581_v24  ;;  %4003 = vst [vmem:[#allocation9_spill] sm:$0xff] %v2584_v25  ;;  %v2619_v40 = vrot.slane %v49_v28, %v2563_v19  ;;  %v2626_v45 = vrot.slane %v49_v28, %v2566_v20  ;;  %v2629_v46 = vrot.slane %v2234_v32, %v2563_v19  ;;  %vm283_vm6 = vcmp.lt.s32.totalorder %v2554_v13, 112 }
   0xa   :  { %157 = vrot.lane.b32.xlu1 %v2490_v3, %s2425_s26  ;;  %155 = vrot.lane.b32.xlu0 %v2478_v1, %s2425_s26  ;;  %4004 = vst [vmem:[#allocation10_spill] sm:$0xff] %v2590_v29  ;;  %4005 = vst [vmem:[#allocation11_spill] sm:$0xff] %v2593_v30  ;;  %v2640_v53 = vrot.slane %v2234_v32, %v2556_v14  ;;  %v2643_v54 = vrot.slane %v2234_v32, %v2566_v20  ;;  %vm243_vm7 = vcmp.lt.s32.totalorder %v2554_v13, 113  ;;  %vm2153_vm14 = vcmask 3072  }
   0xb   :  { %4006 = vst [vmem:[#allocation12_spill] sm:$0xff] %v2596_v31  ;;  %4007 = vst [vmem:[#allocation13_spill] sm:$0xff] %v2606_v35  ;;  %v2650_v58 = vrot.slane %v2234_v32, %v2558_v15  ;;  %vm323_vm8 = vcmp.lt.s32.totalorder %v2554_v13, 111 }
   0xc   :  { %4008 = vst [vmem:[#allocation14_spill] sm:$0xff] %v2609_v36  ;;  %4009 = vst [vmem:[#allocation15_spill] sm:$0xff] %v2616_v39 }
   0xd   :  { %4010 = vst [vmem:[#allocation16_spill] sm:$0xff] %v2619_v40  ;;  %4011 = vst [vmem:[#allocation17_spill] sm:$0xff] %v2626_v45 }
   0xe   :  { %161 = vrot.lane.b32.xlu1 %v2486_v2, %s2425_s26  ;;  %159 = vrot.lane.b32.xlu0 %v2473_v0, %s2425_s26  ;;  %4012 = vst [vmem:[#allocation18_spill] sm:$0xff] %v2629_v46  ;;  %4013 = vst [vmem:[#allocation19_spill] sm:$0xff] %v2643_v54 }
  0x12   :  { %36 = vrot.lane.b32.xlu1 %v2490_v3, %s2426_s27  ;;  %34 = vrot.lane.b32.xlu0 %v2478_v1, %s2426_s27 }
  0x16   :  { %40 = vrot.lane.b32.xlu1 %v2486_v2, %s2426_s27  ;;  %38 = vrot.lane.b32.xlu0 %v2473_v0, %s2426_s27 }
  0x1a   :  { %117 = vrot.lane.b32.xlu1 %v2490_v3, %s2427_s28  ;;  %115 = vrot.lane.b32.xlu0 %v2478_v1, %s2427_s28 }
  0x1e   :  { %121 = vrot.lane.b32.xlu1 %v2486_v2, %s2427_s28  ;;  %119 = vrot.lane.b32.xlu0 %v2473_v0, %s2427_s28 }
  0x22   :  { %197 = vrot.lane.b32.xlu1 %v2490_v3, %s2428_s29  ;;  %195 = vrot.lane.b32.xlu0 %v2478_v1, %s2428_s29 }
  0x26   :  { %201 = vrot.lane.b32.xlu1 %v2486_v2, %s2428_s29  ;;  %199 = vrot.lane.b32.xlu0 %v2473_v0, %s2428_s29 }
  0x2a   :  { %277 = vrot.lane.b32.xlu1 %v2490_v3, %s2429_s30  ;;  %275 = vrot.lane.b32.xlu0 %v2478_v1, %s2429_s30 }
  0x2e   :  { %281 = vrot.lane.b32.xlu1 %v2486_v2, %s2429_s30  ;;  %279 = vrot.lane.b32.xlu0 %v2473_v0, %s2429_s30 }
  0x32   :  { %237 = vrot.lane.b32.xlu1 %v2490_v3, %s2430_s7  ;;  %235 = vrot.lane.b32.xlu0 %v2478_v1, %s2430_s7 }
  0x36   :  { %241 = vrot.lane.b32.xlu1 %v2486_v2, %s2430_s7  ;;  %239 = vrot.lane.b32.xlu0 %v2473_v0, %s2430_s7 }
  0x3a   :  { %317 = vrot.lane.b32.xlu1 %v2490_v3, %s2432_s8  ;;  %315 = vrot.lane.b32.xlu0 %v2478_v1, %s2432_s8 }
  0x3e   :  { %321 = vrot.lane.b32.xlu1 %v2486_v2, %s2432_s8  ;;  %319 = vrot.lane.b32.xlu0 %v2473_v0, %s2432_s8 }
  0x74   :  { %v80_v5 = vpop.permute.xlu1 %79  ;;  %v76_v6 = vpop.permute.xlu0 %75 }
  0x78   :  { %v82_v8 = vpop.permute.xlu1 %81  ;;  %v78_v9 = vpop.permute.xlu0 %77 }
  0x79   :  { %v84_v33 = vsel %vm83_vm1, %v80_v5, %v82_v8  ;;  %v87_v34 = vsel %vm83_vm1, %v82_v8, %v76_v6  ;;  %v86_v37 = vsel %vm83_vm1, %v76_v6, %v78_v9  ;;  %v85_v41 = vsel %vm83_vm1, %v78_v9, %v80_v5 }
  0x7a   :  { %v111_v47 = vmul.f32 %v2575_v22, %v87_v34  ;;  %v114_v48 = vmul.f32 %v2578_v23, %v84_v33  ;;  %v112_v51 = vmul.f32 %v2590_v29, %v86_v37  ;;  %v113_v55 = vmul.f32 %v2606_v35, %v85_v41 }
  0x7c   :  { %v158_v11 = vpop.permute.xlu1 %157  ;;  %v156_v12 = vpop.permute.xlu0 %155  ;;  %v359_v6 = vrot.slane %v111_v47, 4  ;;  %v362_v7 = vrot.slane %v114_v48, 4  ;;  %v360_v10 = vrot.slane %v112_v51, 4 }
  0x7d   :  { %v166_v38 = vsel %vm163_vm3, %v156_v12, %v158_v11 }
  0x7e   :  { %v192_v52 = vmul.f32 %v2609_v36, %v166_v38 }
  0x80   :  { %v162_v16 = vpop.permute.xlu1 %161  ;;  %v160_v17 = vpop.permute.xlu0 %159 }
  0x81   :  { %v167_v42 = vsel %vm163_vm3, %v162_v16, %v156_v12  ;;  %v165_v49 = vsel %vm163_vm3, %v158_v11, %v160_v17  ;;  %v164_v57 = vsel %vm163_vm3, %v160_v17, %v162_v16  ;;  %v372_v11 = vrot.slane %v192_v52, 4 }
  0x82   :  { %v191_v56 = vmul.f32 %v2581_v24, %v167_v42  ;;  %v193_v59 = vmul.f32 %v2616_v39, %v165_v49  ;;  %v194_v12 = vmul.f32 %v2584_v25, %v164_v57  ;;  %v361_v17 = vrot.slane %v113_v55, 4 }
  0x84   :  { %v37_v26 = vpop.permute.xlu1 %36  ;;  %v35_v27 = vpop.permute.xlu0 %34  ;;  %v371_v18 = vrot.slane %v191_v56, 4  ;;  %v373_v28 = vrot.slane %v193_v59, 4 }
  0x85   :  { %v47_v50 = vsel %vm44_vm0, %v35_v27, %v37_v26 }
  0x86   :  { %v72_v60 = vmul.f32 %v2619_v40, %v47_v50 }
  0x88   :  { %v41_v43 = vpop.permute.xlu1 %40  ;;  %v39_v44 = vpop.permute.xlu0 %38  ;;  %v426_v34 = vsel %vm424_vm4, %v72_v60, %v360_v10  ;;  %v2238_v10 = vld [vmem:[%s3924_s0 + $0x7] ss:$8 sm:$0xf] }
  0x89   :  { %v48_v61 = vsel %vm44_vm0, %v41_v43, %v35_v27  ;;  %v45_v62 = vsel %vm44_vm0, %v39_v44, %v41_v43  ;;  %v46_v8 = vsel %vm44_vm0, %v37_v26, %v39_v44  ;;  %v374_v44 = vrot.slane %v194_v12, 4 }
  0x8a   :  { %v71_v21 = vmul.f32 %v2593_v30, %v48_v61  ;;  %v74_v27 = vmul.f32 %v2596_v31, %v45_v62  ;;  %v73_v32 = vmul.f32 %v2626_v45, %v46_v8 }
  0x8c   :  { %v118_v63 = vpop.permute.xlu1 %117  ;;  %v116_v5 = vpop.permute.xlu0 %115  ;;  %v425_v50 = vsel %vm424_vm4, %v71_v21, %v359_v6  ;;  %v428_v51 = vsel %vm424_vm4, %v74_v27, %v362_v7  ;;  %v427_v59 = vsel %vm424_vm4, %v73_v32, %v361_v17  ;;  %v2236_v7 = vld [vmem:[%s3924_s0 + $0x5] ss:$8 sm:$0xf]  ;;  %v2724_v32 = vrot.slane %v2238_v10, %v2558_v15 }
  0x8d   :  { %v126_v9 = vsel %vm123_vm2, %v116_v5, %v118_v63  ;;  %v2708_v12 = vrot.slane %v2236_v7, %v2558_v15  ;;  %v2714_v17 = vrot.slane %v2236_v7, %v2566_v20 }
  0x8e   :  { %v152_v16 = vmul.f32 %v2629_v46, %v126_v9 }
  0x90   :  { %v122_v33 = vpop.permute.xlu1 %121  ;;  %v120_v26 = vpop.permute.xlu0 %119  ;;  %v430_v37 = vsel %vm424_vm4, %v152_v16, %v372_v11  ;;  %v2705_v11 = vrot.slane %v2236_v7, %v2556_v14  ;;  %v2711_v16 = vrot.slane %v2236_v7, %v2563_v19 }
  0x91   :  { %v127_v38 = vsel %vm123_vm2, %v122_v33, %v116_v5  ;;  %v124_v41 = vsel %vm123_vm2, %v120_v26, %v122_v33  ;;  %v125_v42 = vsel %vm123_vm2, %v118_v63, %v120_v26  ;;  %v2675_v43 = vpack.c.bf16 %v430_v37, %v426_v34  ;;  %v2237_v34 = vld [vmem:[%s3924_s0 + $0x6] ss:$8 sm:$0xf] }
  0x92   :  { %v151_v47 = vmul.f32 %v2640_v53, %v127_v38  ;;  %v153_v48 = vmul.f32 %v2643_v54, %v125_v42  ;;  %v154_v49 = vmul.f32 %v2650_v58, %v124_v41  ;;  %v2727_v26 = vrot.slane %v2238_v10, %v2563_v19 }
  0x93   :  { %4014 = vst [vmem:[#allocation20_spill] sm:$0xff] %v2675_v43  ;;  %2276 = vmatprep.subr.bf16.mxu0 %v2675_v43 }
  0x94   :  { %v198_v52 = vpop.permute.xlu1 %197  ;;  %v196_v55 = vpop.permute.xlu0 %195  ;;  %v429_v56 = vsel %vm424_vm4, %v151_v47, %v371_v18  ;;  %v432_v57 = vsel %vm424_vm4, %v154_v49, %v374_v44  ;;  %v431_v60 = vsel %vm424_vm4, %v153_v48, %v373_v28  ;;  %v2717_v18 = vrot.slane %v2238_v10, %v2556_v14 }
  0x95   :  { %v2687_v61 = vpack.c.bf16 %v429_v56, %v425_v50  ;;  %v2689_v62 = vpack.c.bf16 %v432_v57, %v428_v51  ;;  %v2691_v63 = vpack.c.bf16 %v431_v60, %v427_v59  ;;  %v206_v37 = vsel %vm203_vm5, %v196_v55, %v198_v52 }
  0x96   :  { %v2744_v47 = vrot.slane %v2238_v10, %v2566_v20  ;;  %v2751_v51 = vrot.slane %v2237_v34, %v2556_v14  ;;  %v2769_v10 = vrot.slane %v2237_v34, %v2563_v19 }
  0x97   :  { %4015 = vst [vmem:[#allocation21_spill] sm:$0xff] %v2687_v61  ;;  %4016 = vst [vmem:[#allocation22_spill] sm:$0xff] %v2689_v62  ;;  %2278 = vmatpush1.bf16.msra.mxu0 %v2687_v61  ;;  %2284 = vmatprep.subr.bf16.mxu1 %v2689_v62 }
  0x98   :  { %4017 = vst [vmem:[#allocation23_spill] sm:$0xff] %v2691_v63  ;;  %v202_v5 = vpop.permute.xlu1 %201  ;;  %v200_v6 = vpop.permute.xlu0 %199  ;;  %2286 = vmatpush1.bf16.msra.mxu1 %v2691_v63 }
  0x99   :  { %v207_v21 = vsel %vm203_vm5, %v202_v5, %v196_v55  ;;  %v205_v27 = vsel %vm203_vm5, %v198_v52, %v200_v6  ;;  %v204_v38 = vsel %vm203_vm5, %v200_v6, %v202_v5  ;;  %v231_v52 = vmul.f32 %v2705_v11, %v206_v37  ;;  %v2239_v5 = vld [vmem:[%s3924_s0 + $0x20] ss:$8 sm:$0xf] }
  0x9a   :  { %v234_v48 = vmul.f32 %v2708_v12, %v207_v21  ;;  %v232_v49 = vmul.f32 %v2711_v16, %v205_v27  ;;  %v233_v55 = vmul.f32 %v2714_v17, %v204_v38  ;;  %v2772_v21 = vrot.slane %v2237_v34, %v2566_v20 }
  0x9b   :  { %v2776_v37 = vrot.slane %v2239_v5, %v2556_v14  ;;  %v383_v38 = vrot.slane %v231_v52, 4 }
  0x9c   :  { %v278_v8 = vpop.permute.xlu1 %277  ;;  %v276_v9 = vpop.permute.xlu0 %275  ;;  %v386_v27 = vrot.slane %v234_v48, 4 }
  0x9d   :  { %v286_v41 = vsel %vm283_vm6, %v276_v9, %v278_v8 }
  0x9e   :  { %v311_v56 = vmul.f32 %v2717_v18, %v286_v41  ;;  %v385_v41 = vrot.slane %v233_v55, 4 }
  0xa0   :  { %v282_v28 = vpop.permute.xlu1 %281  ;;  %v280_v33 = vpop.permute.xlu0 %279 }
  0xa1   :  { %v287_v42 = vsel %vm283_vm6, %v282_v28, %v276_v9  ;;  %v285_v44 = vsel %vm283_vm6, %v278_v8, %v280_v33  ;;  %v284_v50 = vsel %vm283_vm6, %v280_v33, %v282_v28  ;;  %v2766_v9 = vrot.slane %v2237_v34, %v2558_v15 }
  0xa2   :  { %v314_v57 = vmul.f32 %v2724_v32, %v287_v42  ;;  %v312_v6 = vmul.f32 %v2727_v26, %v285_v44  ;;  %v313_v8 = vmul.f32 %v2744_v47, %v284_v50  ;;  %v384_v28 = vrot.slane %v232_v49, 4 }
  0xa3   :  { %v395_v42 = vrot.slane %v311_v56, 4 }
  0xa4   :  { %v238_v59 = vpop.permute.xlu1 %237  ;;  %v236_v60 = vpop.permute.xlu0 %235  ;;  %v398_v44 = vrot.slane %v314_v57, 4  ;;  %v396_v63 = vrot.slane %v312_v6, 4  ;;  %v397_v49 = vrot.slane %v313_v8, 4  ;;  %v434_v56 = vsel %vm424_vm4, %v2490_v3, %v384_v28 }
  0xa5   :  { %v246_v7 = vsel %vm243_vm7, %v236_v60, %v238_v59  ;;  %v436_v57 = vsel %vm424_vm4, %v2486_v2, %v386_v27  ;;  %v435_v8 = vsel %vm424_vm4, %v2473_v0, %v385_v41  ;;  %v2232_v27 = vld [vmem:[%s3924_s0 + $0x4] ss:$8 sm:$0xf]  ;;  %v2814_v41 = vrot.slane %v2239_v5, %v2563_v19 }
  0xa6   :  { %v271_v33 = vmul.f32 %v2751_v51, %v246_v7 }
  0xa8   :  { %v242_v50 = vpop.permute.xlu1 %241  ;;  %v240_v4 = vpop.permute.xlu0 %239  ;;  %v437_v6 = vsel %vm424_vm4, %v271_v33, %v395_v42  ;;  %v433_v33 = vsel %vm424_vm4, %v2478_v1, %v383_v38 }
  0xa9   :  { %v247_v62 = vsel %vm243_vm7, %v242_v50, %v236_v60  ;;  %v244_v34 = vsel %vm243_vm7, %v240_v4, %v242_v50  ;;  %v245_v48 = vsel %vm243_vm7, %v238_v59, %v240_v4  ;;  %v2792_v60 = vrot.slane %v2239_v5, %v2558_v15 }
  0xaa   :  { %v274_v7 = vmul.f32 %v2766_v9, %v247_v62  ;;  %v272_v52 = vmul.f32 %v2769_v10, %v245_v48  ;;  %v273_v55 = vmul.f32 %v2772_v21, %v244_v34 }
  0xac   :  { %v318_v50 = vpop.permute.xlu1 %317  ;;  %v316_v4 = vpop.permute.xlu0 %315  ;;  %v438_v59 = vsel %vm424_vm4, %v272_v52, %v396_v63  ;;  %v440_v62 = vsel %vm424_vm4, %v274_v7, %v398_v44  ;;  %v439_v34 = vsel %vm424_vm4, %v273_v55, %v397_v49  ;;  %v2817_v44 = vrot.slane %v2239_v5, %v2566_v20 }
  0xad   :  { %v2803_v28 = vpack.c.bf16 %v438_v59, %v434_v56  ;;  %v2805_v48 = vpack.c.bf16 %v440_v62, %v436_v57  ;;  %v2809_v42 = vpack.c.bf16 %v439_v34, %v435_v8  ;;  %v326_v63 = vsel %vm323_vm8, %v316_v4, %v318_v50  ;;  %v27_v8 = vld [vmem:[%s3925_s2] sm:$0xf] }
  0xae   :  { %v2819_v49 = vpack.c.bf16 %v437_v6, %v433_v33  ;;  %v2824_v7 = vrot.slane %v2232_v27, %v2556_v14  ;;  %v2829_v55 = vrot.slane %v2232_v27, %v2563_v19  ;;  %v2832_v5 = vrot.slane %v2232_v27, %v2558_v15 }
  0xaf   :  { %4018 = vst [vmem:[#allocation24_spill] sm:$0xff] %v2803_v28  ;;  %4019 = vst [vmem:[#allocation25_spill] sm:$0xff] %v2805_v48  ;;  %2280 = vmatprep.subr.bf16.mxu0 %v2803_v28  ;;  %2288 = vmatprep.subr.bf16.mxu1 %v2805_v48  ;;  %v2835_v56 = vrot.slane %v2232_v27, %v2566_v20  ;;  %v2838_v57 = vmul.f32 %v2776_v37, %v326_v63  ;;  %v4028_v27 = vmov 0.0  }
  0xb0   :  { %4020 = vst [vmem:[#allocation26_spill] sm:$0xff] %v2809_v42  ;;  %4021 = vst [vmem:[#allocation27_spill] sm:$0xff] %v2819_v49  ;;  %v322_v38 = vpop.permute.xlu1 %321  ;;  %v320_v52 = vpop.permute.xlu0 %319  ;;  %2282 = vmatpush1.bf16.msra.mxu0 %v2819_v49  ;;  %2290 = vmatpush1.bf16.msra.mxu1 %v2809_v42 }
  0xb1   :  { %4022 = vst [vmem:[#allocation28_spill] sm:$0xff] %v2832_v5  ;;  %4023 = vst [vmem:[#allocation29_spill] sm:$0xff] %v2835_v56  ;;  %v327_v14 = vsel %vm323_vm8, %v322_v38, %v316_v4  ;;  %v324_v6 = vsel %vm323_vm8, %v320_v52, %v322_v38  ;;  %v325_v59 = vsel %vm323_vm8, %v318_v50, %v320_v52 }
  0xb2   :  { %4024 = vst [vmem:[#allocation30_spill] sm:$0xff] %v2838_v57  ;;  %v2847_v19 = vmul.f32 %v2792_v60, %v327_v14  ;;  %v2850_v15 = vmul.f32 %v2814_v41, %v325_v59  ;;  %v2853_v20 = vmul.f32 %v2817_v44, %v324_v6  ;;  %v441_v34 = vsel %vm424_vm4, %v2838_v57, %v2824_v7 }
  0xb4   :  { %4025 = vst [vmem:[#allocation31_spill] sm:$0xff] %v2847_v19  ;;  %4026 = vst [vmem:[#allocation32_spill] sm:$0xff] %v2850_v15  ;;  %v442_v4 = vsel %vm424_vm4, %v2850_v15, %v2829_v55  ;;  %v444_v62 = vsel %vm424_vm4, %v2847_v19, %v2832_v5  ;;  %v443_v50 = vsel %vm424_vm4, %v2853_v20, %v2835_v56 }
  0xb5   :  { %4027 = vst [vmem:[#allocation33_spill] sm:$0xff] %v2853_v20  ;;  %2240 = vmatprep.subr.msk.mxu0 %vm449_vm9, %v442_v4  ;;  %2243 = vmatprep.subr.msk.mxu1 %vm449_vm9, %v444_v62 }
  0xb6   :  { %2241 = vmatpush1.msk.msra.mxu0 %vm449_vm9, %v441_v34  ;;  %2244 = vmatpush1.msk.msra.mxu1 %vm449_vm9, %v443_v50 }
  0xb7   :  { %2242 = vmatmul.mubr.msk.f32.vlgmr.msra.gmra.mrb[0].mxu0 %vm445_vm10, %v27_v8  ;;  %2245 = vmatmul.mubr.msk.f32.vlgmr.msra.gmra.mrb[0].mxu1 %vm445_vm10, %v27_v8 }
  0xb8   :  { %885 = vmatprep.mubr.f32.mxu0 %v4028_v27  ;;  %956 = vmatprep.mubr.f32.mxu1 %v4028_v27 }
 0x18a   :  { %v528_v33 = vpop.f32.mrb[0].mxu0  ;;  %v599_v63 = vpop.f32.mrb[0].mxu1 }
 0x18b   :  { %v2878_v38 = vmax.f32 %v528_v33, 0.0  ;;  %v530_v52 = vpop.f32.mrb[1].mxu0  ;;  %v601_v14 = vpop.f32.mrb[1].mxu1  ;;  %v2882_v59 = vmax.f32 %v599_v63, 0.0 }
 0x18c   :  { %v2880_v6 = vmax.f32 %v530_v52, 0.0  ;;  %v2886_v4 = vmax.f32 %v601_v14, 0.0 }
 0x18d   :  { %626 = vrot.lane.b32.xlu0 %v2878_v38, %s2424_s25 }
 0x18e   :  { %628 = vrot.lane.b32.xlu1 %v2880_v6, %s2424_s25 }
 0x191   :  { %630 = vrot.lane.b32.xlu0 %v2882_v59, %s2424_s25 }
 0x192   :  { %632 = vrot.lane.b32.xlu1 %v2886_v4, %s2424_s25 }
 0x195   :  { %658 = vrot.lane.b32.xlu0 %v2878_v38, %s2425_s26 }
 0x196   :  { %660 = vrot.lane.b32.xlu1 %v2880_v6, %s2425_s26 }
 0x199   :  { %662 = vrot.lane.b32.xlu0 %v2882_v59, %s2425_s26 }
 0x19a   :  { %664 = vrot.lane.b32.xlu1 %v2886_v4, %s2425_s26 }
 0x19d   :  { %610 = vrot.lane.b32.xlu0 %v2878_v38, %s2426_s27 }
 0x19e   :  { %612 = vrot.lane.b32.xlu1 %v2880_v6, %s2426_s27 }
 0x1a1   :  { %614 = vrot.lane.b32.xlu0 %v2882_v59, %s2426_s27 }
 0x1a2   :  { %616 = vrot.lane.b32.xlu1 %v2886_v4, %s2426_s27 }
 0x1a5   :  { %642 = vrot.lane.b32.xlu0 %v2878_v38, %s2427_s28 }
 0x1a6   :  { %644 = vrot.lane.b32.xlu1 %v2880_v6, %s2427_s28 }
 0x1a9   :  { %646 = vrot.lane.b32.xlu0 %v2882_v59, %s2427_s28 }
 0x1aa   :  { %648 = vrot.lane.b32.xlu1 %v2886_v4, %s2427_s28 }
 0x1ad   :  { %674 = vrot.lane.b32.xlu0 %v2878_v38, %s2428_s29 }
 0x1ae   :  { %676 = vrot.lane.b32.xlu1 %v2880_v6, %s2428_s29 }
 0x1b1   :  { %678 = vrot.lane.b32.xlu0 %v2882_v59, %s2428_s29 }
 0x1b2   :  { %680 = vrot.lane.b32.xlu1 %v2886_v4, %s2428_s29 }
 0x1b5   :  { %706 = vrot.lane.b32.xlu0 %v2878_v38, %s2429_s30 }
 0x1b6   :  { %708 = vrot.lane.b32.xlu1 %v2880_v6, %s2429_s30 }
 0x1b9   :  { %710 = vrot.lane.b32.xlu0 %v2882_v59, %s2429_s30 }
 0x1ba   :  { %712 = vrot.lane.b32.xlu1 %v2886_v4, %s2429_s30 }
 0x1bd   :  { %690 = vrot.lane.b32.xlu0 %v2878_v38, %s2430_s7 }
 0x1be   :  { %692 = vrot.lane.b32.xlu1 %v2880_v6, %s2430_s7 }
 0x1c1   :  { %694 = vrot.lane.b32.xlu0 %v2882_v59, %s2430_s7 }
 0x1c2   :  { %696 = vrot.lane.b32.xlu1 %v2886_v4, %s2430_s7 }
 0x1c5   :  { %722 = vrot.lane.b32.xlu0 %v2878_v38, %s2432_s8 }
 0x1c6   :  { %724 = vrot.lane.b32.xlu1 %v2880_v6, %s2432_s8 }
 0x1c9   :  { %726 = vrot.lane.b32.xlu0 %v2882_v59, %s2432_s8 }
 0x1ca   :  { %728 = vrot.lane.b32.xlu1 %v2886_v4, %s2432_s8 }
 0x1ff   :  { %v627_v62 = vpop.permute.xlu0 %626 }
 0x200   :  { %v629_v50 = vpop.permute.xlu1 %628 }
 0x201   :  { %v636_v42 = vsel %vm83_vm1, %v627_v62, %v629_v50 }
 0x202   :  { %v639_v43 = vmul.f32 %v636_v42, %v2590_v29 }
 0x203   :  { %v631_v8 = vpop.permute.xlu0 %630 }
 0x204   :  { %v633_v34 = vpop.permute.xlu1 %632  ;;  %v635_v15 = vsel %vm83_vm1, %v629_v50, %v631_v8  ;;  %v743_v56 = vrot.slane %v639_v43, 4 }
 0x205   :  { %v637_v49 = vsel %vm83_vm1, %v633_v34, %v627_v62  ;;  %v634_v48 = vsel %vm83_vm1, %v631_v8, %v633_v34  ;;  %v640_v50 = vmul.f32 %v635_v15, %v2606_v35 }
 0x206   :  { %v638_v62 = vmul.f32 %v637_v49, %v2575_v22  ;;  %v641_v34 = vmul.f32 %v634_v48, %v2578_v23 }
 0x207   :  { %v659_v33 = vpop.permute.xlu0 %658 }
 0x208   :  { %v661_v63 = vpop.permute.xlu1 %660  ;;  %v742_v8 = vrot.slane %v638_v62, 4 }
 0x209   :  { %v668_v28 = vsel %vm163_vm3, %v659_v33, %v661_v63 }
 0x20a   :  { %v671_v0 = vmul.f32 %v668_v28, %v2609_v36 }
 0x20b   :  { %v663_v52 = vpop.permute.xlu0 %662 }
 0x20c   :  { %v665_v14 = vpop.permute.xlu1 %664  ;;  %v667_v20 = vsel %vm163_vm3, %v661_v63, %v663_v52 }
 0x20d   :  { %v672_v1 = vmul.f32 %v667_v20, %v2616_v39  ;;  %v666_v42 = vsel %vm163_vm3, %v663_v52, %v665_v14  ;;  %v669_v63 = vsel %vm163_vm3, %v665_v14, %v659_v33  ;;  %v755_v52 = vrot.slane %v671_v0, 4 }
 0x20e   :  { %v673_v43 = vmul.f32 %v666_v42, %v2584_v25  ;;  %v745_v14 = vrot.slane %v641_v34, 4 }
 0x20f   :  { %v611_v2 = vpop.permute.xlu0 %610 }
 0x210   :  { %v613_v3 = vpop.permute.xlu1 %612 }
 0x211   :  { %v620_v57 = vsel %vm44_vm0, %v611_v2, %v613_v3 }
 0x212   :  { %v623_v29 = vmul.f32 %v620_v57, %v2619_v40  ;;  %v670_v57 = vmul.f32 %v669_v63, %v2581_v24 }
 0x213   :  { %v615_v61 = vpop.permute.xlu0 %614 }
 0x214   :  { %v617_v19 = vpop.permute.xlu1 %616  ;;  %v619_v49 = vsel %vm44_vm0, %v613_v3, %v615_v61  ;;  %v756_v3 = vrot.slane %v672_v1, 4 }
 0x215   :  { %v618_v28 = vsel %vm44_vm0, %v615_v61, %v617_v19  ;;  %v621_v20 = vsel %vm44_vm0, %v617_v19, %v611_v2  ;;  %v624_v62 = vmul.f32 %v619_v49, %v2626_v45  ;;  %v787_v61 = vsel %vm424_vm4, %v623_v29, %v743_v56 }
 0x216   :  { %v622_v36 = vmul.f32 %v621_v20, %v2593_v30  ;;  %v625_v2 = vmul.f32 %v618_v28, %v2596_v31  ;;  %v754_v29 = vrot.slane %v670_v57, 4  ;;  %v757_v56 = vrot.slane %v673_v43, 4 }
 0x217   :  { %v643_v27 = vpop.permute.xlu0 %642 }
 0x218   :  { %v645_v48 = vpop.permute.xlu1 %644 }
 0x219   :  { %v652_v33 = vsel %vm123_vm2, %v643_v27, %v645_v48 }
 0x21a   :  { %v655_v15 = vmul.f32 %v652_v33, %v2629_v46  ;;  %v744_v33 = vrot.slane %v640_v50, 4 }
 0x21b   :  { %v647_v39 = vpop.permute.xlu0 %646 }
 0x21c   :  { %v651_v0 = vsel %vm123_vm2, %v645_v48, %v647_v39  ;;  %v649_v19 = vpop.permute.xlu1 %648  ;;  %v791_v63 = vsel %vm424_vm4, %v655_v15, %v755_v52 }
 0x21d   :  { %v656_v42 = vmul.f32 %v651_v0, %v2643_v54  ;;  %v650_v1 = vsel %vm123_vm2, %v647_v39, %v649_v19  ;;  %v653_v34 = vsel %vm123_vm2, %v649_v19, %v643_v27  ;;  %v2291_v49 = vpack.c.bf16 %v791_v63, %v787_v61 }
 0x21e   :  { %v654_v20 = vmul.f32 %v653_v34, %v2640_v53  ;;  %v657_v28 = vmul.f32 %v650_v1, %v2650_v58  ;;  %v786_v0 = vsel %vm424_vm4, %v622_v36, %v742_v8  ;;  %v789_v54 = vsel %vm424_vm4, %v625_v2, %v745_v14 }
 0x21f   :  { %v675_v48 = vpop.permute.xlu0 %674  ;;  %2292 = vmatprep.subr.bf16.mxu0 %v2291_v49  ;;  %v792_v52 = vsel %vm424_vm4, %v656_v42, %v756_v3  ;;  %v788_v61 = vsel %vm424_vm4, %v624_v62, %v744_v33 }
 0x220   :  { %v677_v15 = vpop.permute.xlu1 %676  ;;  %v790_v39 = vsel %vm424_vm4, %v654_v20, %v754_v29  ;;  %v793_v27 = vsel %vm424_vm4, %v657_v28, %v757_v56  ;;  %v2301_v19 = vpack.c.bf16 %v792_v52, %v788_v61 }
 0x221   :  { %v2293_v57 = vpack.c.bf16 %v790_v39, %v786_v0  ;;  %v2299_v43 = vpack.c.bf16 %v793_v27, %v789_v54  ;;  %v684_v36 = vsel %vm203_vm5, %v675_v48, %v677_v15 }
 0x222   :  { %v686_v29 = vmul.f32 %v684_v36, %v2705_v11 }
 0x223   :  { %v679_v63 = vpop.permute.xlu0 %678  ;;  %2294 = vmatpush1.bf16.msra.mxu0 %v2293_v57  ;;  %2300 = vmatprep.subr.bf16.mxu1 %v2299_v43 }
 0x224   :  { %2302 = vmatpush1.bf16.msra.mxu1 %v2301_v19  ;;  %v681_v50 = vpop.permute.xlu1 %680  ;;  %v683_v8 = vsel %vm203_vm5, %v677_v15, %v679_v63  ;;  %v766_v61 = vrot.slane %v686_v29, 4 }
 0x225   :  { %v685_v54 = vsel %vm203_vm5, %v681_v50, %v675_v48  ;;  %v682_v62 = vsel %vm203_vm5, %v679_v63, %v681_v50  ;;  %v687_v56 = vmul.f32 %v683_v8, %v2711_v16 }
 0x226   :  { %v689_v20 = vmul.f32 %v685_v54, %v2708_v12  ;;  %v688_v48 = vmul.f32 %v682_v62, %v2714_v17 }
 0x227   :  { %v707_v3 = vpop.permute.xlu0 %706  ;;  %v767_v19 = vrot.slane %v687_v56, 4 }
 0x228   :  { %v709_v42 = vpop.permute.xlu1 %708  ;;  %v769_v63 = vrot.slane %v689_v20, 4 }
 0x229   :  { %v716_v2 = vsel %vm283_vm6, %v707_v3, %v709_v42 }
 0x22a   :  { %v718_v52 = vmul.f32 %v716_v2, %v2717_v18 }
 0x22b   :  { %v711_v1 = vpop.permute.xlu0 %710 }
 0x22c   :  { %v713_v14 = vpop.permute.xlu1 %712  ;;  %v715_v34 = vsel %vm283_vm6, %v709_v42, %v711_v1  ;;  %v778_v42 = vrot.slane %v718_v52, 4  ;;  %v794_v52 = vsel %vm424_vm4, %v2878_v38, %v766_v61 }
 0x22d   :  { %v714_v49 = vsel %vm283_vm6, %v711_v1, %v713_v14  ;;  %v717_v28 = vsel %vm283_vm6, %v713_v14, %v707_v3  ;;  %v719_v15 = vmul.f32 %v715_v34, %v2727_v26  ;;  %v768_v3 = vrot.slane %v688_v48, 4 }
 0x22e   :  { %v720_v39 = vmul.f32 %v714_v49, %v2744_v47  ;;  %v721_v57 = vmul.f32 %v717_v28, %v2724_v32  ;;  %v795_v28 = vsel %vm424_vm4, %v2880_v6, %v767_v19 }
 0x22f   :  { %v691_v33 = vpop.permute.xlu0 %690  ;;  %v779_v1 = vrot.slane %v719_v15, 4  ;;  %v797_v15 = vsel %vm424_vm4, %v2886_v4, %v769_v63 }
 0x230   :  { %v693_v0 = vpop.permute.xlu1 %692  ;;  %v780_v54 = vrot.slane %v720_v39, 4  ;;  %v781_v34 = vrot.slane %v721_v57, 4 }
 0x231   :  { %v700_v27 = vsel %vm243_vm7, %v691_v33, %v693_v0 }
 0x232   :  { %v702_v43 = vmul.f32 %v700_v27, %v2751_v51  ;;  %v796_v27 = vsel %vm424_vm4, %v2882_v59, %v768_v3 }
 0x233   :  { %v695_v50 = vpop.permute.xlu0 %694 }
 0x234   :  { %v699_v36 = vsel %vm243_vm7, %v693_v0, %v695_v50  ;;  %v697_v8 = vpop.permute.xlu1 %696  ;;  %v798_v56 = vsel %vm424_vm4, %v702_v43, %v778_v42 }
 0x235   :  { %v703_v14 = vmul.f32 %v699_v36, %v2769_v10  ;;  %v698_v62 = vsel %vm243_vm7, %v695_v50, %v697_v8  ;;  %v701_v2 = vsel %vm243_vm7, %v697_v8, %v691_v33  ;;  %v2297_v43 = vpack.c.bf16 %v798_v56, %v794_v52 }
 0x236   :  { %v704_v49 = vmul.f32 %v698_v62, %v2772_v21  ;;  %v705_v29 = vmul.f32 %v701_v2, %v2766_v9  ;;  %v4029_v2 = vld [vmem:[#allocation29_spill] sm:$0xff] }
 0x237   :  { %v723_v20 = vpop.permute.xlu0 %722  ;;  %v799_v48 = vsel %vm424_vm4, %v703_v14, %v779_v1 }
 0x238   :  { %v725_v33 = vpop.permute.xlu1 %724  ;;  %v2295_v0 = vpack.c.bf16 %v799_v48, %v795_v28  ;;  %v801_v39 = vsel %vm424_vm4, %v705_v29, %v781_v34  ;;  %v800_v57 = vsel %vm424_vm4, %v704_v49, %v780_v54  ;;  %v2246_v54 = vld [vmem:[%s3925_s2 + $0x4] sm:$0xf]  ;;  %v4030_v49 = vmov 0.0  }
 0x239   :  { %v732_v6 = vsel %vm323_vm8, %v723_v20, %v725_v33  ;;  %v2303_v19 = vpack.c.bf16 %v801_v39, %v797_v15  ;;  %v2305_v50 = vpack.c.bf16 %v800_v57, %v796_v27  ;;  %v4031_v27 = vld [vmem:[#allocation3_spill] sm:$0xff] }
 0x23a   :  { %2296 = vmatprep.subr.bf16.mxu0 %v2295_v0  ;;  %v734_v4 = vmul.f32 %v732_v6, %v2776_v37  ;;  %v4033_v6 = vld [vmem:[#allocation2_spill] sm:$0xff] }
 0x23b   :  { %v727_v38 = vpop.permute.xlu0 %726  ;;  %2298 = vmatpush1.bf16.msra.mxu0 %v2297_v43  ;;  %2304 = vmatprep.subr.bf16.mxu1 %v2303_v19 }
 0x23c   :  { %v731_v61 = vsel %vm323_vm8, %v725_v33, %v727_v38  ;;  %2306 = vmatpush1.bf16.msra.mxu1 %v2305_v50  ;;  %v729_v63 = vpop.permute.xlu1 %728  ;;  %v802_v14 = vsel %vm424_vm4, %v734_v4, %v2824_v7 }
 0x23d   :  { %v735_v59 = vmul.f32 %v731_v61, %v2814_v41  ;;  %v730_v3 = vsel %vm323_vm8, %v727_v38, %v729_v63  ;;  %v733_v42 = vsel %vm323_vm8, %v729_v63, %v723_v20 }
 0x23e   :  { %v736_v1 = vmul.f32 %v730_v3, %v2817_v44  ;;  %v737_v36 = vmul.f32 %v733_v42, %v2792_v60 }
 0x23f   :  { %v803_v8 = vsel %vm424_vm4, %v735_v59, %v2829_v55 }
 0x240   :  { %2247 = vmatprep.subr.msk.mxu0 %vm449_vm9, %v803_v8  ;;  %v805_v62 = vsel %vm424_vm4, %v737_v36, %v2832_v5  ;;  %v804_v34 = vsel %vm424_vm4, %v736_v1, %v4029_v2  ;;  %v4039_v2 = vld [vmem:[#allocation32_spill] sm:$0xff] }
 0x241   :  { %2248 = vmatpush1.msk.msra.mxu0 %vm449_vm9, %v802_v14  ;;  %2250 = vmatprep.subr.msk.mxu1 %vm449_vm9, %v805_v62 }
 0x242   :  { %2249 = vmatmul.mubr.msk.f32.vlgmr.msra.gmra.mrb[2].mxu0 %vm445_vm10, %v2246_v54  ;;  %2251 = vmatpush1.msk.msra.mxu1 %vm449_vm9, %v804_v34 }
 0x243   :  { %2252 = vmatmul.mubr.msk.f32.vlgmr.msra.gmra.mrb[2].mxu1 %vm445_vm10, %v2246_v54  ;;  %1260 = vmatprep.mubr.f32.mxu0 %v4030_v49 }
 0x244   :  { %1331 = vmatprep.mubr.f32.mxu1 %v4030_v49 }
 0x315   :  { %v887_v29 = vpop.f32.mrb[2].mxu0 }
 0x316   :  { %v963_v56 = vmax.f32 %v887_v29, 0.0  ;;  %v889_v20 = vpop.f32.mrb[3].mxu0  ;;  %v958_v28 = vpop.f32.mrb[2].mxu1 }
 0x317   :  { %v964_v48 = vmax.f32 %v889_v20, 0.0  ;;  %v965_v52 = vmax.f32 %v958_v28, 0.0  ;;  %v960_v15 = vpop.f32.mrb[3].mxu1 }
 0x318   :  { %v966_v33 = vmax.f32 %v960_v15, 0.0 }
 0x319   :  { %v971_v0 = vcombine.low %v963_v56, %v964_v48  ;;  %v4035_v48 = vld [vmem:[#allocation10_spill] sm:$0xff] }
 0x31a   :  { %v972_v39 = vcombine.low %v965_v52, %v966_v33 }
 0x31b   :  { %v3086_v57 = vadd.f32 %v971_v0, %v4031_v27 }
 0x31c   :  { %v3089_v43 = vadd.f32 %v972_v39, %v4033_v6 }
 0x31d   :  { %4032 = vst [vmem:[#allocation3_spill] sm:$0xff] %v3086_v57  ;;  %1001 = vrot.lane.b32.xlu0 %v3086_v57, %s2424_s25  ;;  %v3095_v19 = vcombine.high %v3086_v57, %v3086_v57 }
 0x31e   :  { %4034 = vst [vmem:[#allocation2_spill] sm:$0xff] %v3089_v43  ;;  %v3101_v50 = vcombine.high %v3089_v43, %v3089_v43 }
 0x31f   :  { %1003 = vrot.lane.b32.xlu1 %v3095_v19, %s2424_s25 }
 0x321   :  { %1005 = vrot.lane.b32.xlu0 %v3089_v43, %s2424_s25 }
 0x323   :  { %1007 = vrot.lane.b32.xlu1 %v3101_v50, %s2424_s25 }
 0x325   :  { %1033 = vrot.lane.b32.xlu0 %v3086_v57, %s2425_s26 }
 0x327   :  { %1035 = vrot.lane.b32.xlu1 %v3095_v19, %s2425_s26 }
 0x329   :  { %1037 = vrot.lane.b32.xlu0 %v3089_v43, %s2425_s26 }
 0x32b   :  { %1039 = vrot.lane.b32.xlu1 %v3101_v50, %s2425_s26 }
 0x32d   :  { %985 = vrot.lane.b32.xlu0 %v3086_v57, %s2426_s27 }
 0x32f   :  { %987 = vrot.lane.b32.xlu1 %v3095_v19, %s2426_s27 }
 0x331   :  { %989 = vrot.lane.b32.xlu0 %v3089_v43, %s2426_s27 }
 0x333   :  { %991 = vrot.lane.b32.xlu1 %v3101_v50, %s2426_s27 }
 0x335   :  { %1017 = vrot.lane.b32.xlu0 %v3086_v57, %s2427_s28 }
 0x337   :  { %1019 = vrot.lane.b32.xlu1 %v3095_v19, %s2427_s28 }
 0x339   :  { %1021 = vrot.lane.b32.xlu0 %v3089_v43, %s2427_s28 }
 0x33b   :  { %1023 = vrot.lane.b32.xlu1 %v3101_v50, %s2427_s28 }
 0x33d   :  { %1049 = vrot.lane.b32.xlu0 %v3086_v57, %s2428_s29 }
 0x33f   :  { %1051 = vrot.lane.b32.xlu1 %v3095_v19, %s2428_s29 }
 0x341   :  { %1053 = vrot.lane.b32.xlu0 %v3089_v43, %s2428_s29 }
 0x343   :  { %1055 = vrot.lane.b32.xlu1 %v3101_v50, %s2428_s29 }
 0x345   :  { %1081 = vrot.lane.b32.xlu0 %v3086_v57, %s2429_s30 }
 0x347   :  { %1083 = vrot.lane.b32.xlu1 %v3095_v19, %s2429_s30 }
 0x349   :  { %1085 = vrot.lane.b32.xlu0 %v3089_v43, %s2429_s30 }
 0x34b   :  { %1087 = vrot.lane.b32.xlu1 %v3101_v50, %s2429_s30 }
 0x34d   :  { %1065 = vrot.lane.b32.xlu0 %v3086_v57, %s2430_s7 }
 0x34f   :  { %1067 = vrot.lane.b32.xlu1 %v3095_v19, %s2430_s7 }
 0x351   :  { %1069 = vrot.lane.b32.xlu0 %v3089_v43, %s2430_s7 }
 0x353   :  { %1071 = vrot.lane.b32.xlu1 %v3101_v50, %s2430_s7 }
 0x355   :  { %1097 = vrot.lane.b32.xlu0 %v3086_v57, %s2432_s8 }
 0x357   :  { %1099 = vrot.lane.b32.xlu1 %v3095_v19, %s2432_s8 }
 0x359   :  { %1101 = vrot.lane.b32.xlu0 %v3089_v43, %s2432_s8 }
 0x35b   :  { %1103 = vrot.lane.b32.xlu1 %v3101_v50, %s2432_s8 }
 0x38f   :  { %v1002_v38 = vpop.permute.xlu0 %1001 }
 0x391   :  { %v1004_v4 = vpop.permute.xlu1 %1003 }
 0x392   :  { %v1011_v8 = vsel %vm83_vm1, %v1002_v38, %v1004_v4 }
 0x393   :  { %v1006_v61 = vpop.permute.xlu0 %1005  ;;  %v1014_v52 = vmul.f32 %v1011_v8, %v4035_v48 }
 0x394   :  { %v1010_v54 = vsel %vm83_vm1, %v1004_v4, %v1006_v61 }
 0x395   :  { %v1008_v63 = vpop.permute.xlu1 %1007  ;;  %v3179_v15 = vmul.f32 %v1010_v54, %v2606_v35 }
 0x396   :  { %v1009_v62 = vsel %vm83_vm1, %v1006_v61, %v1008_v63  ;;  %v1012_v34 = vsel %vm83_vm1, %v1008_v63, %v1002_v38  ;;  %v4036_v61 = vld [vmem:[#allocation14_spill] sm:$0xff] }
 0x397   :  { %v1034_v59 = vpop.permute.xlu0 %1033  ;;  %v3186_v39 = vmul.f32 %v1012_v34, %v2575_v22  ;;  %v3189_v27 = vmul.f32 %v1009_v62, %v2578_v23  ;;  %v1118_v62 = vrot.slane %v1014_v52, 4 }
 0x399   :  { %v1036_v3 = vpop.permute.xlu1 %1035 }
 0x39a   :  { %v1043_v56 = vsel %vm163_vm3, %v1034_v59, %v1036_v3 }
 0x39b   :  { %v1038_v42 = vpop.permute.xlu0 %1037  ;;  %v3195_v63 = vmul.f32 %v1043_v56, %v4036_v61  ;;  %v1119_v56 = vrot.slane %v3179_v15, 4 }
 0x39c   :  { %v1042_v20 = vsel %vm163_vm3, %v1036_v3, %v1038_v42  ;;  %v4037_v3 = vld [vmem:[#allocation15_spill] sm:$0xff] }
 0x39d   :  { %v1040_v1 = vpop.permute.xlu1 %1039 }
 0x39e   :  { %v1041_v33 = vsel %vm163_vm3, %v1038_v42, %v1040_v1  ;;  %v1044_v0 = vsel %vm163_vm3, %v1040_v1, %v1034_v59  ;;  %v3198_v42 = vmul.f32 %v1042_v20, %v4037_v3  ;;  %v1117_v20 = vrot.slane %v3186_v39, 4 }
 0x39f   :  { %v986_v36 = vpop.permute.xlu0 %985  ;;  %v3203_v1 = vmul.f32 %v1044_v0, %v2581_v24  ;;  %v3206_v8 = vmul.f32 %v1041_v33, %v2584_v25  ;;  %v1130_v33 = vrot.slane %v3195_v63, 4 }
 0x3a0   :  { %v1131_v25 = vrot.slane %v3198_v42, 4 }
 0x3a1   :  { %v988_v14 = vpop.permute.xlu1 %987 }
 0x3a2   :  { %v995_v29 = vsel %vm44_vm0, %v986_v36, %v988_v14 }
 0x3a3   :  { %v990_v28 = vpop.permute.xlu0 %989  ;;  %v998_v6 = vmul.f32 %v995_v29, %v2619_v40 }
 0x3a4   :  { %v994_v38 = vsel %vm44_vm0, %v988_v14, %v990_v28 }
 0x3a5   :  { %v992_v4 = vpop.permute.xlu1 %991  ;;  %v999_v34 = vmul.f32 %v994_v38, %v2626_v45  ;;  %v1850_v0 = vrot.slane %v998_v6, 4  ;;  %v1129_v38 = vrot.slane %v3203_v1, 4  ;;  %v1162_v35 = vsel %vm424_vm4, %v998_v6, %v1118_v62 }
 0x3a6   :  { %v993_v59 = vsel %vm44_vm0, %v990_v28, %v992_v4  ;;  %v996_v54 = vsel %vm44_vm0, %v992_v4, %v986_v36  ;;  %v1120_v28 = vrot.slane %v3189_v27, 4 }
 0x3a7   :  { %v1018_v14 = vpop.permute.xlu0 %1017  ;;  %v1000_v29 = vmul.f32 %v993_v59, %v2596_v31  ;;  %v997_v36 = vmul.f32 %v996_v54, %v2593_v30  ;;  %v1132_v59 = vrot.slane %v3206_v8, 4  ;;  %v1163_v40 = vsel %vm424_vm4, %v999_v34, %v1119_v56  ;;  %v4038_v30 = vld [vmem:[#allocation19_spill] sm:$0xff] }
 0x3a8   :  { %v1851_v3 = vrot.slane %v999_v34, 4  ;;  %v3231_v5 = vsel %vm424_vm4, %v4039_v2, %v1850_v0 }
 0x3a9   :  { %v1020_v24 = vpop.permute.xlu1 %1019  ;;  %v1852_v61 = vrot.slane %v1000_v29, 4  ;;  %v1164_v2 = vsel %vm424_vm4, %v1000_v29, %v1120_v28 }
 0x3aa   :  { %v1027_v4 = vsel %vm123_vm2, %v1018_v14, %v1020_v24 }
 0x3ab   :  { %v1030_v31 = vmul.f32 %v1027_v4, %v2629_v46  ;;  %v1022_v45 = vpop.permute.xlu0 %1021  ;;  %v1849_v4 = vrot.slane %v997_v36, 4 }
 0x3ac   :  { %v1026_v23 = vsel %vm123_vm2, %v1020_v24, %v1022_v45  ;;  %v1161_v24 = vsel %vm424_vm4, %v997_v36, %v1117_v20 }
 0x3ad   :  { %v1862_v54 = vrot.slane %v1030_v31, 4  ;;  %v1031_v22 = vmul.f32 %v1026_v23, %v4038_v30  ;;  %v1024_v48 = vpop.permute.xlu1 %1023  ;;  %v1166_v49 = vsel %vm424_vm4, %v1030_v31, %v1130_v33 }
 0x3ae   :  { %v1025_v6 = vsel %vm123_vm2, %v1022_v45, %v1024_v48  ;;  %v1028_v62 = vsel %vm123_vm2, %v1024_v48, %v1018_v14  ;;  %v2307_v34 = vpack.c.bf16 %v1166_v49, %v1162_v35  ;;  %v4040_v45 = vld [vmem:[#allocation31_spill] sm:$0xff] }
 0x3af   :  { %v1863_v56 = vrot.slane %v1031_v22, 4  ;;  %v1029_v23 = vmul.f32 %v1028_v62, %v2640_v53  ;;  %v1032_v30 = vmul.f32 %v1025_v6, %v2650_v58  ;;  %v1050_v31 = vpop.permute.xlu0 %1049  ;;  %v1167_v33 = vsel %vm424_vm4, %v1031_v22, %v1131_v25  ;;  %v4042_v25 = vld [vmem:[#allocation30_spill] sm:$0xff] }
 0x3b0   :  { %2308 = vmatprep.subr.bf16.mxu0 %v2307_v34  ;;  %v3243_v0 = vsel %vm424_vm4, %v1014_v52, %v1862_v54  ;;  %v3247_v48 = vsel %vm424_vm4, %v4040_v45, %v1852_v61  ;;  %v3255_v52 = vsel %vm424_vm4, %v4042_v25, %v1849_v4  ;;  %v2317_v28 = vpack.c.bf16 %v1167_v33, %v1163_v40  ;;  %v4046_v54 = vld [vmem:[#allocation33_spill] sm:$0xff] }
 0x3b1   :  { %4041 = vst [vmem:[#allocation32_spill] sm:$0xff] %v3247_v48  ;;  %v1165_v35 = vsel %vm424_vm4, %v1029_v23, %v1129_v38  ;;  %v1861_v49 = vrot.slane %v1029_v23, 4  ;;  %v1864_v14 = vrot.slane %v1032_v30, 4  ;;  %v1052_v20 = vpop.permute.xlu1 %1051  ;;  %v1168_v36 = vsel %vm424_vm4, %v1032_v30, %v1132_v59  ;;  %4043 = vst [vmem:[#allocation31_spill] sm:$0xff] %v3255_v52 }
 0x3b2   :  { %v2309_v6 = vpack.c.bf16 %v1165_v35, %v1161_v24  ;;  %v2315_v62 = vpack.c.bf16 %v1168_v36, %v1164_v2  ;;  %v3267_v30 = vsel %vm424_vm4, %v3179_v15, %v1863_v56  ;;  %v1059_v15 = vsel %vm203_vm5, %v1050_v31, %v1052_v20 }
 0x3b3   :  { %v1054_v29 = vpop.permute.xlu0 %1053  ;;  %v3259_v61 = vsel %vm424_vm4, %v3189_v27, %v1864_v14  ;;  %v3263_v38 = vsel %vm424_vm4, %v3186_v39, %v1861_v49  ;;  %4045 = vst [vmem:[#allocation34_spill] sm:$0xff] %v3267_v30  ;;  %v3275_v27 = vsel %vm424_vm4, %v4046_v54, %v1851_v3  ;;  %v1061_v33 = vmul.f32 %v1059_v15, %v2705_v11 }
 0x3b4   :  { %4044 = vst [vmem:[#allocation30_spill] sm:$0xff] %v3263_v38  ;;  %2310 = vmatpush1.bf16.msra.mxu0 %v2309_v6  ;;  %2316 = vmatprep.subr.bf16.mxu1 %v2315_v62  ;;  %4047 = vst [vmem:[#allocation33_spill] sm:$0xff] %v3275_v27  ;;  %v1058_v24 = vsel %vm203_vm5, %v1052_v20, %v1054_v29  ;;  %v1870_v15 = vcombine.low %v3089_v43, %v3089_v43 }
 0x3b5   :  { %2318 = vmatpush1.bf16.msra.mxu1 %v2317_v28  ;;  %v1056_v4 = vpop.permute.xlu1 %1055  ;;  %v1062_v2 = vmul.f32 %v1058_v24, %v2711_v16  ;;  %v1869_v28 = vcombine.low %v3086_v57, %v3086_v57 }
 0x3b6   :  { %v1060_v56 = vsel %vm203_vm5, %v1056_v4, %v1050_v31  ;;  %v1057_v49 = vsel %vm203_vm5, %v1054_v29, %v1056_v4  ;;  %v1141_v31 = vrot.slane %v1061_v33, 4 }
 0x3b7   :  { %v1082_v34 = vpop.permute.xlu0 %1081  ;;  %v3288_v45 = vmul.f32 %v1060_v56, %v2708_v12  ;;  %v1142_v54 = vrot.slane %v1062_v2, 4  ;;  %v1063_v29 = vmul.f32 %v1057_v49, %v2714_v17 }
 0x3b9   :  { %v1084_v23 = vpop.permute.xlu1 %1083  ;;  %v1144_v4 = vrot.slane %v3288_v45, 4 }
 0x3ba   :  { %v1091_v35 = vsel %vm283_vm6, %v1082_v34, %v1084_v23 }
 0x3bb   :  { %v1086_v3 = vpop.permute.xlu0 %1085  ;;  %v3297_v36 = vmul.f32 %v1091_v35, %v2717_v18  ;;  %v1172_v40 = vsel %vm424_vm4, %v3101_v50, %v1144_v4 }
 0x3bc   :  { %v1090_v20 = vsel %vm283_vm6, %v1084_v23, %v1086_v3  ;;  %v3319_v23 = vsel %vm424_vm4, %v3203_v1, %v1869_v28  ;;  %v3336_v1 = vsel %vm424_vm4, %v3206_v8, %v3089_v43  ;;  %v1170_v28 = vsel %vm424_vm4, %v3095_v19, %v1142_v54 }
 0x3bd   :  { %v1088_v14 = vpop.permute.xlu1 %1087  ;;  %v3310_v24 = vmul.f32 %v1090_v20, %v2727_v26  ;;  %4049 = vst [vmem:[#allocation36_spill] sm:$0xff] %v3319_v23  ;;  %4050 = vst [vmem:[#allocation37_spill] sm:$0xff] %v3336_v1 }
 0x3be   :  { %v1089_v6 = vsel %vm283_vm6, %v1086_v3, %v1088_v14  ;;  %v1092_v62 = vsel %vm283_vm6, %v1088_v14, %v1082_v34  ;;  %v3315_v34 = vsel %vm424_vm4, %v3195_v63, %v3086_v57  ;;  %v1153_v14 = vrot.slane %v3297_v36, 4 }
 0x3bf   :  { %v1066_v25 = vpop.permute.xlu0 %1065  ;;  %4048 = vst [vmem:[#allocation35_spill] sm:$0xff] %v3315_v34  ;;  %v3322_v3 = vmul.f32 %v1089_v6, %v2744_v47  ;;  %v3325_v35 = vmul.f32 %v1092_v62, %v2724_v32  ;;  %v1169_v63 = vsel %vm424_vm4, %v3086_v57, %v1141_v31  ;;  %v1143_v6 = vrot.slane %v1063_v29, 4  ;;  %v4069_v34 = vld [vmem:[#allocation13_spill] sm:$0xff] }
 0x3c1   :  { %v1068_v56 = vpop.permute.xlu1 %1067  ;;  %v1155_v8 = vrot.slane %v3322_v3, 4  ;;  %v1156_v27 = vrot.slane %v3325_v35, 4  ;;  %v1171_v52 = vsel %vm424_vm4, %v3089_v43, %v1143_v6  ;;  %v4066_v43 = vld [vmem:[#allocation14_spill] sm:$0xff] }
 0x3c2   :  { %v1075_v49 = vsel %vm243_vm7, %v1066_v25, %v1068_v56 }
 0x3c3   :  { %v1077_v20 = vmul.f32 %v1075_v49, %v2751_v51  ;;  %v1070_v39 = vpop.permute.xlu0 %1069  ;;  %v1154_v49 = vrot.slane %v3310_v24, 4 }
 0x3c4   :  { %v1074_v62 = vsel %vm243_vm7, %v1068_v56, %v1070_v39 }
 0x3c5   :  { %v1173_v59 = vsel %vm424_vm4, %v1077_v20, %v1153_v14  ;;  %v1877_v31 = vrot.slane %v1077_v20, 4  ;;  %v1078_v22 = vmul.f32 %v1074_v62, %v2769_v10  ;;  %v1072_v57 = vpop.permute.xlu1 %1071 }
 0x3c6   :  { %v1073_v56 = vsel %vm243_vm7, %v1070_v39, %v1072_v57  ;;  %v1076_v19 = vsel %vm243_vm7, %v1072_v57, %v1066_v25  ;;  %v2313_v30 = vpack.c.bf16 %v1173_v59, %v1169_v63 }
 0x3c7   :  { %v1878_v54 = vrot.slane %v1078_v22, 4  ;;  %v1079_v50 = vmul.f32 %v1073_v56, %v2772_v21  ;;  %v1080_v4 = vmul.f32 %v1076_v19, %v2766_v9  ;;  %v1098_v14 = vpop.permute.xlu0 %1097  ;;  %v1174_v20 = vsel %vm424_vm4, %v1078_v22, %v1154_v49 }
 0x3c8   :  { %v2311_v62 = vpack.c.bf16 %v1174_v20, %v1170_v28  ;;  %v3359_v38 = vsel %vm424_vm4, %v1061_v33, %v1877_v31  ;;  %v2253_v20 = vld [vmem:[%s3925_s2 + $0x8] sm:$0xf] }
 0x3c9   :  { %4051 = vst [vmem:[#allocation38_spill] sm:$0xff] %v3359_v38  ;;  %v1175_v39 = vsel %vm424_vm4, %v1079_v50, %v1155_v8  ;;  %v1879_v48 = vrot.slane %v1079_v50, 4  ;;  %v1880_v57 = vrot.slane %v1080_v4, 4  ;;  %v1100_v25 = vpop.permute.xlu1 %1099  ;;  %v1176_v56 = vsel %vm424_vm4, %v1080_v4, %v1156_v27 }
 0x3ca   :  { %v1107_v19 = vsel %vm323_vm8, %v1098_v14, %v1100_v25  ;;  %2312 = vmatprep.subr.bf16.mxu0 %v2311_v62  ;;  %v2319_v22 = vpack.c.bf16 %v1176_v56, %v1172_v40  ;;  %v2321_v28 = vpack.c.bf16 %v1175_v39, %v1171_v52  ;;  %v3366_v59 = vsel %vm424_vm4, %v1062_v2, %v1878_v54  ;;  %v4063_v54 = vld [vmem:[#allocation10_spill] sm:$0xff] }
 0x3cb   :  { %4052 = vst [vmem:[#allocation39_spill] sm:$0xff] %v3366_v59  ;;  %v1109_v63 = vmul.f32 %v1107_v19, %v2776_v37  ;;  %v1102_v33 = vpop.permute.xlu0 %1101  ;;  %2314 = vmatpush1.bf16.msra.mxu0 %v2313_v30  ;;  %v3373_v49 = vsel %vm424_vm4, %v3288_v45, %v1880_v57  ;;  %v3379_v52 = vsel %vm424_vm4, %v3198_v42, %v1870_v15  ;;  %v4058_v19 = vld [vmem:[#allocation29_spill] sm:$0xff] }
 0x3cc   :  { %4053 = vst [vmem:[#allocation40_spill] sm:$0xff] %v3373_v49  ;;  %4054 = vst [vmem:[#allocation41_spill] sm:$0xff] %v3379_v52  ;;  %v1106_v40 = vsel %vm323_vm8, %v1100_v25, %v1102_v33  ;;  %2320 = vmatprep.subr.bf16.mxu1 %v2319_v22  ;;  %v3386_v2 = vsel %vm424_vm4, %v1063_v29, %v1879_v48  ;;  %v4057_v25 = vld [vmem:[#allocation28_spill] sm:$0xff] }
 0x3cd   :  { %4055 = vst [vmem:[#allocation42_spill] sm:$0xff] %v3386_v2  ;;  %v1905_v31 = vrot.slane %v1109_v63, 4  ;;  %v1110_v45 = vmul.f32 %v1106_v40, %v2814_v41  ;;  %2322 = vmatpush1.bf16.msra.mxu1 %v2321_v28  ;;  %v1104_v8 = vpop.permute.xlu1 %1103  ;;  %v1177_v62 = vsel %vm424_vm4, %v1109_v63, %v2824_v7  ;;  %v4067_v2 = vld [vmem:[#allocation15_spill] sm:$0xff] }
 0x3ce   :  { %v1105_v42 = vsel %vm323_vm8, %v1102_v33, %v1104_v8  ;;  %v1108_v15 = vsel %vm323_vm8, %v1104_v8, %v1098_v14 }
 0x3cf   :  { %v1906_v50 = vrot.slane %v1110_v45, 4  ;;  %v1111_v4 = vmul.f32 %v1105_v42, %v2817_v44  ;;  %v1112_v48 = vmul.f32 %v1108_v15, %v2792_v60  ;;  %v1178_v29 = vsel %vm424_vm4, %v1110_v45, %v2829_v55 }
 0x3d0   :  { %2254 = vmatprep.subr.msk.mxu0 %vm449_vm9, %v1178_v29  ;;  %v3407_v14 = vsel %vm424_vm4, %v3297_v36, %v1905_v31  ;;  %v4060_v36 = vmov 0.0  }
 0x3d1   :  { %4056 = vst [vmem:[#allocation43_spill] sm:$0xff] %v3407_v14  ;;  %v1907_v39 = vrot.slane %v1111_v4, 4  ;;  %v1908_v57 = vrot.slane %v1112_v48, 4  ;;  %2255 = vmatpush1.msk.msra.mxu0 %vm449_vm9, %v1177_v62  ;;  %v1180_v56 = vsel %vm424_vm4, %v1112_v48, %v4057_v25  ;;  %v1179_v22 = vsel %vm424_vm4, %v1111_v4, %v4058_v19 }
 0x3d2   :  { %2256 = vmatmul.mubr.msk.f32.vlgmr.msra.gmra.mrb[4].mxu0 %vm445_vm10, %v2253_v20  ;;  %2257 = vmatprep.subr.msk.mxu1 %vm449_vm9, %v1180_v56  ;;  %v3418_v28 = vsel %vm424_vm4, %v3310_v24, %v1906_v50 }
 0x3d3   :  { %4059 = vst [vmem:[#allocation28_spill] sm:$0xff] %v3418_v28  ;;  %2258 = vmatpush1.msk.msra.mxu1 %vm449_vm9, %v1179_v22  ;;  %1619 = vmatprep.mubr.f32.mxu0 %v4060_v36  ;;  %v3424_v63 = vsel %vm424_vm4, %v3325_v35, %v1908_v57  ;;  %v3428_v33 = vsel %vm424_vm4, %v3322_v3, %v1907_v39  ;;  %v4065_v28 = vld [vmem:[#allocation7_spill] sm:$0xff] }
 0x3d4   :  { %4061 = vst [vmem:[#allocation29_spill] sm:$0xff] %v3424_v63  ;;  %4062 = vst [vmem:[#allocation44_spill] sm:$0xff] %v3428_v33  ;;  %2259 = vmatmul.mubr.msk.f32.vlgmr.msra.gmra.mrb[4].mxu1 %vm445_vm10, %v2253_v20 }
 0x3d5   :  { %1690 = vmatprep.mubr.f32.mxu1 %v4060_v36 }
 0x4a5   :  { %v1262_v40 = vpop.f32.mrb[4].mxu0 }
 0x4a6   :  { %v3432_v31 = vmax.f32 %v1262_v40, 0.0  ;;  %v1264_v24 = vpop.f32.mrb[5].mxu0 }
 0x4a7   :  { %v3434_v45 = vmax.f32 %v1264_v24, 0.0  ;;  %v1333_v8 = vpop.f32.mrb[4].mxu1 }
 0x4a8   :  { %1360 = vrot.lane.b32.xlu0 %v3432_v31, %s2424_s25  ;;  %v3438_v35 = vmax.f32 %v1333_v8, 0.0  ;;  %v1335_v42 = vpop.f32.mrb[5].mxu1 }
 0x4a9   :  { %1362 = vrot.lane.b32.xlu1 %v3434_v45, %s2424_s25  ;;  %v3442_v3 = vmax.f32 %v1335_v42, 0.0 }
 0x4ac   :  { %1364 = vrot.lane.b32.xlu0 %v3438_v35, %s2424_s25 }
 0x4ad   :  { %1366 = vrot.lane.b32.xlu1 %v3442_v3, %s2424_s25 }
 0x4b0   :  { %1392 = vrot.lane.b32.xlu0 %v3432_v31, %s2425_s26 }
 0x4b1   :  { %1394 = vrot.lane.b32.xlu1 %v3434_v45, %s2425_s26 }
 0x4b4   :  { %1396 = vrot.lane.b32.xlu0 %v3438_v35, %s2425_s26 }
 0x4b5   :  { %1398 = vrot.lane.b32.xlu1 %v3442_v3, %s2425_s26 }
 0x4b8   :  { %1344 = vrot.lane.b32.xlu0 %v3432_v31, %s2426_s27 }
 0x4b9   :  { %1346 = vrot.lane.b32.xlu1 %v3434_v45, %s2426_s27 }
 0x4bc   :  { %1348 = vrot.lane.b32.xlu0 %v3438_v35, %s2426_s27 }
 0x4bd   :  { %1350 = vrot.lane.b32.xlu1 %v3442_v3, %s2426_s27 }
 0x4c0   :  { %1376 = vrot.lane.b32.xlu0 %v3432_v31, %s2427_s28 }
 0x4c1   :  { %1378 = vrot.lane.b32.xlu1 %v3434_v45, %s2427_s28 }
 0x4c4   :  { %1380 = vrot.lane.b32.xlu0 %v3438_v35, %s2427_s28 }
 0x4c5   :  { %1382 = vrot.lane.b32.xlu1 %v3442_v3, %s2427_s28 }
 0x4c8   :  { %1408 = vrot.lane.b32.xlu0 %v3432_v31, %s2428_s29 }
 0x4c9   :  { %1410 = vrot.lane.b32.xlu1 %v3434_v45, %s2428_s29 }
 0x4cc   :  { %1412 = vrot.lane.b32.xlu0 %v3438_v35, %s2428_s29 }
 0x4cd   :  { %1414 = vrot.lane.b32.xlu1 %v3442_v3, %s2428_s29 }
 0x4d0   :  { %1440 = vrot.lane.b32.xlu0 %v3432_v31, %s2429_s30 }
 0x4d1   :  { %1442 = vrot.lane.b32.xlu1 %v3434_v45, %s2429_s30 }
 0x4d4   :  { %1444 = vrot.lane.b32.xlu0 %v3438_v35, %s2429_s30 }
 0x4d5   :  { %1446 = vrot.lane.b32.xlu1 %v3442_v3, %s2429_s30 }
 0x4d8   :  { %1424 = vrot.lane.b32.xlu0 %v3432_v31, %s2430_s7 }
 0x4d9   :  { %1426 = vrot.lane.b32.xlu1 %v3434_v45, %s2430_s7 }
 0x4dc   :  { %1428 = vrot.lane.b32.xlu0 %v3438_v35, %s2430_s7 }
 0x4dd   :  { %1430 = vrot.lane.b32.xlu1 %v3442_v3, %s2430_s7 }
 0x4e0   :  { %1456 = vrot.lane.b32.xlu0 %v3432_v31, %s2432_s8 }
 0x4e1   :  { %1458 = vrot.lane.b32.xlu1 %v3434_v45, %s2432_s8 }
 0x4e4   :  { %1460 = vrot.lane.b32.xlu0 %v3438_v35, %s2432_s8 }
 0x4e5   :  { %1462 = vrot.lane.b32.xlu1 %v3442_v3, %s2432_s8 }
 0x51a   :  { %v1361_v15 = vpop.permute.xlu0 %1360 }
 0x51b   :  { %v1363_v50 = vpop.permute.xlu1 %1362 }
 0x51c   :  { %v1370_v22 = vsel %vm83_vm1, %v1361_v15, %v1363_v50 }
 0x51d   :  { %v1373_v27 = vmul.f32 %v1370_v22, %v4063_v54  ;;  %v4068_v54 = vld [vmem:[#allocation16_spill] sm:$0xff] }
 0x51e   :  { %v1365_v4 = vpop.permute.xlu0 %1364 }
 0x51f   :  { %v1367_v48 = vpop.permute.xlu1 %1366  ;;  %v1369_v63 = vsel %vm83_vm1, %v1363_v50, %v1365_v4  ;;  %v1477_v49 = vrot.slane %v1373_v27, 4  ;;  %v4071_v27 = vld [vmem:[#allocation9_spill] sm:$0xff] }
 0x520   :  { %v1371_v40 = vsel %vm83_vm1, %v1367_v48, %v1361_v15  ;;  %v1368_v24 = vsel %vm83_vm1, %v1365_v4, %v1367_v48  ;;  %v4064_v15 = vld [vmem:[#allocation6_spill] sm:$0xff]  ;;  %v1374_v50 = vmul.f32 %v1369_v63, %v4069_v34 }
 0x521   :  { %v1372_v14 = vmul.f32 %v1371_v40, %v4064_v15  ;;  %v1375_v48 = vmul.f32 %v1368_v24, %v4065_v28  ;;  %v4073_v15 = vld [vmem:[#allocation11_spill] sm:$0xff] }
 0x522   :  { %v1393_v29 = vpop.permute.xlu0 %1392 }
 0x523   :  { %v1395_v20 = vpop.permute.xlu1 %1394  ;;  %v1476_v24 = vrot.slane %v1372_v14, 4 }
 0x524   :  { %v1402_v8 = vsel %vm163_vm3, %v1393_v29, %v1395_v20 }
 0x525   :  { %v1405_v52 = vmul.f32 %v1402_v8, %v4066_v43  ;;  %v1479_v43 = vrot.slane %v1375_v48, 4 }
 0x526   :  { %v1397_v62 = vpop.permute.xlu0 %1396 }
 0x527   :  { %v1399_v39 = vpop.permute.xlu1 %1398  ;;  %v1401_v30 = vsel %vm163_vm3, %v1395_v20, %v1397_v62 }
 0x528   :  { %v1406_v23 = vmul.f32 %v1401_v30, %v4067_v2  ;;  %v1400_v22 = vsel %vm163_vm3, %v1397_v62, %v1399_v39  ;;  %v1403_v20 = vsel %vm163_vm3, %v1399_v39, %v1393_v29  ;;  %v1489_v39 = vrot.slane %v1405_v52, 4 }
 0x529   :  { %v1407_v2 = vmul.f32 %v1400_v22, %v4071_v27  ;;  %v4075_v22 = vld [vmem:[#allocation19_spill] sm:$0xff] }
 0x52a   :  { %v1345_v57 = vpop.permute.xlu0 %1344 }
 0x52b   :  { %v1347_v56 = vpop.permute.xlu1 %1346 }
 0x52c   :  { %v1354_v6 = vsel %vm44_vm0, %v1345_v57, %v1347_v56 }
 0x52d   :  { %v1357_v38 = vmul.f32 %v1354_v6, %v4068_v54  ;;  %v4070_v6 = vld [vmem:[#allocation8_spill] sm:$0xff]  ;;  %v4072_v54 = vld [vmem:[#allocation17_spill] sm:$0xff] }
 0x52e   :  { %v1349_v42 = vpop.permute.xlu0 %1348  ;;  %v1404_v8 = vmul.f32 %v1403_v20, %v4070_v6 }
 0x52f   :  { %v1351_v33 = vpop.permute.xlu1 %1350  ;;  %v1353_v4 = vsel %vm44_vm0, %v1347_v56, %v1349_v42  ;;  %v1490_v56 = vrot.slane %v1406_v23, 4 }
 0x530   :  { %v1352_v30 = vsel %vm44_vm0, %v1349_v42, %v1351_v33  ;;  %v1355_v62 = vsel %vm44_vm0, %v1351_v33, %v1345_v57  ;;  %v1358_v14 = vmul.f32 %v1353_v4, %v4072_v54  ;;  %v1521_v42 = vsel %vm424_vm4, %v1357_v38, %v1477_v49  ;;  %v4074_v33 = vld [vmem:[#allocation12_spill] sm:$0xff] }
 0x531   :  { %v1356_v34 = vmul.f32 %v1355_v62, %v4073_v15  ;;  %v1359_v57 = vmul.f32 %v1352_v30, %v4074_v33  ;;  %v1488_v38 = vrot.slane %v1404_v8, 4  ;;  %v1491_v49 = vrot.slane %v1407_v2, 4 }
 0x532   :  { %v1377_v1 = vpop.permute.xlu0 %1376 }
 0x533   :  { %v1379_v40 = vpop.permute.xlu1 %1378 }
 0x534   :  { %v1386_v29 = vsel %vm123_vm2, %v1377_v1, %v1379_v40 }
 0x535   :  { %v1389_v63 = vmul.f32 %v1386_v29, %v2629_v46  ;;  %v1478_v29 = vrot.slane %v1374_v50, 4 }
 0x536   :  { %v1381_v28 = vpop.permute.xlu0 %1380 }
 0x537   :  { %v1385_v52 = vsel %vm123_vm2, %v1379_v40, %v1381_v28  ;;  %v1383_v59 = vpop.permute.xlu1 %1382  ;;  %v1525_v20 = vsel %vm424_vm4, %v1389_v63, %v1489_v39  ;;  %v1520_v39 = vsel %vm424_vm4, %v1356_v34, %v1476_v24 }
 0x538   :  { %v1390_v27 = vmul.f32 %v1385_v52, %v4075_v22  ;;  %v1384_v23 = vsel %vm123_vm2, %v1381_v28, %v1383_v59  ;;  %v1387_v48 = vsel %vm123_vm2, %v1383_v59, %v1377_v1  ;;  %v2323_v4 = vpack.c.bf16 %v1525_v20, %v1521_v42 }
 0x539   :  { %v1388_v62 = vmul.f32 %v1387_v48, %v2640_v53  ;;  %v1391_v30 = vmul.f32 %v1384_v23, %v2650_v58  ;;  %v1523_v52 = vsel %vm424_vm4, %v1359_v57, %v1479_v43  ;;  %v1522_v59 = vsel %vm424_vm4, %v1358_v14, %v1478_v29 }
 0x53a   :  { %v1526_v40 = vsel %vm424_vm4, %v1390_v27, %v1490_v56  ;;  %v1409_v46 = vpop.permute.xlu0 %1408  ;;  %2324 = vmatprep.subr.bf16.mxu0 %v2323_v4 }
 0x53b   :  { %v1524_v63 = vsel %vm424_vm4, %v1388_v62, %v1488_v38  ;;  %v1411_v28 = vpop.permute.xlu1 %1410  ;;  %v1527_v1 = vsel %vm424_vm4, %v1391_v30, %v1491_v49  ;;  %v2333_v42 = vpack.c.bf16 %v1526_v40, %v1522_v59 }
 0x53c   :  { %v2325_v2 = vpack.c.bf16 %v1524_v63, %v1520_v39  ;;  %v2331_v8 = vpack.c.bf16 %v1527_v1, %v1523_v52  ;;  %v1418_v24 = vsel %vm203_vm5, %v1409_v46, %v1411_v28 }
 0x53d   :  { %v1420_v49 = vmul.f32 %v1418_v24, %v2705_v11 }
 0x53e   :  { %v1413_v20 = vpop.permute.xlu0 %1412  ;;  %2326 = vmatpush1.bf16.msra.mxu0 %v2325_v2  ;;  %2332 = vmatprep.subr.bf16.mxu1 %v2331_v8 }
 0x53f   :  { %2334 = vmatpush1.bf16.msra.mxu1 %v2333_v42  ;;  %v1415_v50 = vpop.permute.xlu1 %1414  ;;  %v1417_v43 = vsel %vm203_vm5, %v1411_v28, %v1413_v20  ;;  %v1500_v8 = vrot.slane %v1420_v49, 4 }
 0x540   :  { %v1416_v14 = vsel %vm203_vm5, %v1413_v20, %v1415_v50  ;;  %v1419_v23 = vsel %vm203_vm5, %v1415_v50, %v1409_v46  ;;  %v1421_v62 = vmul.f32 %v1417_v43, %v2711_v16 }
 0x541   :  { %v1422_v30 = vmul.f32 %v1416_v14, %v2714_v17  ;;  %v1423_v46 = vmul.f32 %v1419_v23, %v2708_v12 }
 0x542   :  { %v1441_v27 = vpop.permute.xlu0 %1440  ;;  %v1501_v42 = vrot.slane %v1421_v62, 4 }
 0x543   :  { %v1443_v56 = vpop.permute.xlu1 %1442  ;;  %v1502_v20 = vrot.slane %v1422_v30, 4  ;;  %v1528_v30 = vsel %vm424_vm4, %v3432_v31, %v1500_v8 }
 0x544   :  { %v1450_v48 = vsel %vm283_vm6, %v1441_v27, %v1443_v56 }
 0x545   :  { %v1452_v39 = vmul.f32 %v1450_v48, %v2717_v18 }
 0x546   :  { %v1445_v34 = vpop.permute.xlu0 %1444 }
 0x547   :  { %v1447_v57 = vpop.permute.xlu1 %1446  ;;  %v1449_v4 = vsel %vm283_vm6, %v1443_v56, %v1445_v34  ;;  %v1512_v56 = vrot.slane %v1452_v39, 4  ;;  %v1529_v39 = vsel %vm424_vm4, %v3434_v45, %v1501_v42 }
 0x548   :  { %v1448_v38 = vsel %vm283_vm6, %v1445_v34, %v1447_v57  ;;  %v1451_v29 = vsel %vm283_vm6, %v1447_v57, %v1441_v27  ;;  %v1453_v63 = vmul.f32 %v1449_v4, %v2727_v26  ;;  %v1503_v27 = vrot.slane %v1423_v46, 4 }
 0x549   :  { %v1454_v52 = vmul.f32 %v1448_v38, %v2744_v47  ;;  %v1455_v59 = vmul.f32 %v1451_v29, %v2724_v32  ;;  %v1530_v29 = vsel %vm424_vm4, %v3438_v35, %v1502_v20 }
 0x54a   :  { %v1425_v40 = vpop.permute.xlu0 %1424  ;;  %v1513_v34 = vrot.slane %v1453_v63, 4 }
 0x54b   :  { %v1427_v28 = vpop.permute.xlu1 %1426  ;;  %v1514_v14 = vrot.slane %v1454_v52, 4  ;;  %v1515_v4 = vrot.slane %v1455_v59, 4 }
 0x54c   :  { %v1434_v1 = vsel %vm243_vm7, %v1425_v40, %v1427_v28 }
 0x54d   :  { %v1436_v2 = vmul.f32 %v1434_v1, %v2751_v51  ;;  %v1531_v1 = vsel %vm424_vm4, %v3442_v3, %v1503_v27 }
 0x54e   :  { %v1429_v50 = vpop.permute.xlu0 %1428 }
 0x54f   :  { %v1433_v24 = vsel %vm243_vm7, %v1427_v28, %v1429_v50  ;;  %v1431_v43 = vpop.permute.xlu1 %1430  ;;  %v1532_v38 = vsel %vm424_vm4, %v1436_v2, %v1512_v56 }
 0x550   :  { %v1437_v57 = vmul.f32 %v1433_v24, %v2769_v10  ;;  %v1432_v23 = vsel %vm243_vm7, %v1429_v50, %v1431_v43  ;;  %v1435_v48 = vsel %vm243_vm7, %v1431_v43, %v1425_v40  ;;  %v2329_v2 = vpack.c.bf16 %v1532_v38, %v1528_v30  ;;  %v4077_v38 = vld [vmem:[#allocation21_spill] sm:$0xff]  ;;  %v4080_v30 = vld [vmem:[#allocation23_spill] sm:$0xff] }
 0x551   :  { %v1438_v49 = vmul.f32 %v1432_v23, %v2772_v21  ;;  %v1439_v62 = vmul.f32 %v1435_v48, %v2766_v9 }
 0x552   :  { %v1457_v46 = vpop.permute.xlu0 %1456  ;;  %v1533_v63 = vsel %vm424_vm4, %v1437_v57, %v1513_v34 }
 0x553   :  { %v1534_v40 = vsel %vm424_vm4, %v1438_v49, %v1514_v14  ;;  %v1459_v28 = vpop.permute.xlu1 %1458  ;;  %v2327_v52 = vpack.c.bf16 %v1533_v63, %v1529_v39  ;;  %v1535_v59 = vsel %vm424_vm4, %v1439_v62, %v1515_v4  ;;  %v2260_v14 = vld [vmem:[%s3925_s2 + $0xc] sm:$0xf]  ;;  %v4076_v4 = vld [vmem:[#allocation20_spill] sm:$0xff]  ;;  %v4078_v49 = vld [vmem:[#allocation22_spill] sm:$0xff]  ;;  %v4083_v39 = vpack.c.bf16 %v3243_v0, %v3231_v5 }
 0x554   :  { %v1466_v31 = vsel %vm323_vm8, %v1457_v46, %v1459_v28  ;;  %v2335_v35 = vpack.c.bf16 %v1535_v59, %v1531_v1  ;;  %v2337_v8 = vpack.c.bf16 %v1534_v40, %v1530_v29  ;;  %v4079_v62 = vld [vmem:[#allocation24_spill] sm:$0xff]  ;;  %v4081_v29 = vld [vmem:[#allocation25_spill] sm:$0xff]  ;;  %v4084_v63 = vld [vmem:[#allocation26_spill] sm:$0xff] }
 0x555   :  { %2328 = vmatprep.subr.bf16.mxu0 %v2327_v52  ;;  %v1468_v45 = vmul.f32 %v1466_v31, %v2776_v37  ;;  %v4085_v40 = vld [vmem:[#allocation32_spill] sm:$0xff]  ;;  %v4087_v52 = vld [vmem:[#allocation30_spill] sm:$0xff]  ;;  %v4088_v1 = vld [vmem:[#allocation31_spill] sm:$0xff] }
 0x556   :  { %v1461_v20 = vpop.permute.xlu0 %1460  ;;  %2330 = vmatpush1.bf16.msra.mxu0 %v2329_v2  ;;  %2336 = vmatprep.subr.bf16.mxu1 %v2335_v35  ;;  %v4089_v59 = vpack.c.bf16 %v4087_v52, %v4088_v1  ;;  %v4090_v31 = vld [vmem:[#allocation39_spill] sm:$0xff]  ;;  %v4096_v5 = vld [vmem:[#allocation40_spill] sm:$0xff]  ;;  %v4097_v0 = vld [vmem:[#allocation37_spill] sm:$0xff] }
 0x557   :  { %v1465_v42 = vsel %vm323_vm8, %v1459_v28, %v1461_v20  ;;  %2338 = vmatpush1.bf16.msra.mxu1 %v2337_v8  ;;  %v1463_v50 = vpop.permute.xlu1 %1462  ;;  %v1536_v57 = vsel %vm424_vm4, %v1468_v45, %v2824_v7  ;;  %v4086_v28 = vpack.c.bf16 %v3259_v61, %v4085_v40  ;;  %v4091_v2 = vld [vmem:[#allocation35_spill] sm:$0xff]  ;;  %v4094_v8 = vld [vmem:[#allocation33_spill] sm:$0xff]  ;;  %v4098_v45 = vpack.c.bf16 %v4096_v5, %v4097_v0 }
 0x558   :  { %v1469_v3 = vmul.f32 %v1465_v42, %v2814_v41  ;;  %v1464_v27 = vsel %vm323_vm8, %v1461_v20, %v1463_v50  ;;  %v1467_v56 = vsel %vm323_vm8, %v1463_v50, %v1457_v46  ;;  %v4082_v46 = vld [vmem:[#allocation27_spill] sm:$0xff]  ;;  %v4092_v35 = vpack.c.bf16 %v4090_v31, %v4091_v2  ;;  %v4099_v42 = vld [vmem:[#allocation38_spill] sm:$0xff]  ;;  %v4100_v50 = vld [vmem:[#allocation36_spill] sm:$0xff] }
 0x559   :  { %v1470_v34 = vmul.f32 %v1464_v27, %v2817_v44  ;;  %v1471_v24 = vmul.f32 %v1467_v56, %v2792_v60  ;;  %v4101_v61 = vpack.c.bf16 %v4099_v42, %v4100_v50  ;;  %v4103_v27 = vld [vmem:[#allocation41_spill] sm:$0xff]  ;;  %v4107_v31 = vld [vmem:[#allocation10_spill] sm:$0xff] }
 0x55a   :  { %v1537_v43 = vsel %vm424_vm4, %v1469_v3, %v2829_v55  ;;  %v4102_v3 = vld [vmem:[#allocation42_spill] sm:$0xff]  ;;  %v4108_v0 = vld [vmem:[#allocation13_spill] sm:$0xff] }
 0x55b   :  { %2261 = vmatprep.subr.msk.mxu0 %vm449_vm9, %v1537_v43  ;;  %v1539_v23 = vsel %vm424_vm4, %v1471_v24, %v4057_v25  ;;  %v1538_v48 = vsel %vm424_vm4, %v1470_v34, %v4058_v19  ;;  %v4104_v56 = vpack.c.bf16 %v4102_v3, %v4103_v27  ;;  %v4110_v27 = vld [vmem:[#allocation7_spill] sm:$0xff] }
 0x55c   :  { %2262 = vmatpush1.msk.msra.mxu0 %vm449_vm9, %v1536_v57  ;;  %2264 = vmatprep.subr.msk.mxu1 %vm449_vm9, %v1539_v23 }
 0x55d   :  { %2263 = vmatmul.mubr.msk.f32.vlgmr.msra.gmra.mrb[6].mxu0 %vm445_vm10, %v2260_v14  ;;  %2265 = vmatpush1.msk.msra.mxu1 %vm449_vm9, %v1538_v48 }
 0x55e   :  { %2340 = vmatprep.subr.bf16.mxu0 %v4076_v4  ;;  %2266 = vmatmul.mubr.msk.f32.vlgmr.msra.gmra.mrb[6].mxu1 %vm445_vm10, %v2260_v14 }
 0x55f   :  { %2342 = vmatpush1.bf16.msra.mxu0 %v4077_v38  ;;  %2370 = vmatprep.subr.bf16.mxu1 %v4078_v49 }
 0x560   :  { %2344 = vmatprep.subr.bf16.mxu0 %v4079_v62  ;;  %2372 = vmatpush1.bf16.msra.mxu1 %v4080_v30  ;;  %v4105_v62 = vld [vmem:[#allocation3_spill] sm:$0xff] }
 0x561   :  { %2374 = vmatprep.subr.bf16.mxu1 %v4081_v29  ;;  %2066 = vmatprep.mubr.f32.mxu0 %v4060_v36  ;;  %v4106_v29 = vld [vmem:[#allocation2_spill] sm:$0xff] }
 0x562   :  { %2137 = vmatprep.mubr.f32.mxu1 %v4060_v36  ;;  %v4093_v36 = vld [vmem:[#allocation34_spill] sm:$0xff] }
 0x563   :  { %2346 = vmatpush1.bf16.msra.mxu0 %v4082_v46  ;;  %v4095_v20 = vpack.c.bf16 %v4093_v36, %v4094_v8 }
 0x564   :  { %2348 = vmatprep.subr.bf16.mxu0 %v4083_v39  ;;  %2376 = vmatpush1.bf16.msra.mxu1 %v4084_v63 }
 0x565   :  { %2378 = vmatprep.subr.bf16.mxu1 %v4086_v28 }
 0x567   :  { %2350 = vmatpush1.bf16.msra.mxu0 %v4089_v59 }
 0x568   :  { %2352 = vmatprep.subr.bf16.mxu0 %v4092_v35  ;;  %2380 = vmatpush1.bf16.msra.mxu1 %v4095_v20 }
 0x569   :  { %2382 = vmatprep.subr.bf16.mxu1 %v4098_v45 }
 0x56b   :  { %2354 = vmatpush1.bf16.msra.mxu0 %v4101_v61  ;;  %v4109_v61 = vld [vmem:[#allocation6_spill] sm:$0xff] }
 0x56c   :  { %2384 = vmatpush1.bf16.msra.mxu1 %v4104_v56 }
 0x630   :  { %v1621_v34 = vpop.f32.mrb[6].mxu0 }
 0x631   :  { %v1697_v24 = vmax.f32 %v1621_v34, 0.0  ;;  %v1623_v43 = vpop.f32.mrb[7].mxu0  ;;  %v1692_v14 = vpop.f32.mrb[6].mxu1  ;;  %v4111_v34 = vld [vmem:[#allocation16_spill] sm:$0xff] }
 0x632   :  { %v1698_v57 = vmax.f32 %v1623_v43, 0.0  ;;  %v1699_v23 = vmax.f32 %v1692_v14, 0.0  ;;  %v1694_v48 = vpop.f32.mrb[7].mxu1 }
 0x633   :  { %v1700_v4 = vmax.f32 %v1694_v48, 0.0 }
 0x634   :  { %v1705_v38 = vcombine.low %v1697_v24, %v1698_v57 }
 0x635   :  { %v1706_v49 = vcombine.low %v1699_v23, %v1700_v4 }
 0x636   :  { %v3672_v30 = vadd.f32 %v1705_v38, %v4105_v62  ;;  %v4112_v62 = vld [vmem:[#allocation28_spill] sm:$0xff] }
 0x637   :  { %v3675_v46 = vadd.f32 %v1706_v49, %v4106_v29 }
 0x638   :  { %1733 = vrot.lane.b32.xlu0 %v3672_v30, %s2424_s25  ;;  %v3681_v39 = vcombine.high %v3672_v30, %v3672_v30 }
 0x639   :  { %v3689_v63 = vcombine.high %v3675_v46, %v3675_v46 }
 0x63a   :  { %1735 = vrot.lane.b32.xlu1 %v3681_v39, %s2424_s25 }
 0x63c   :  { %1737 = vrot.lane.b32.xlu0 %v3675_v46, %s2424_s25 }
 0x63e   :  { %1739 = vrot.lane.b32.xlu1 %v3689_v63, %s2424_s25 }
 0x640   :  { %1717 = vrot.lane.b32.xlu0 %v3672_v30, %s2426_s27 }
 0x642   :  { %1719 = vrot.lane.b32.xlu1 %v3681_v39, %s2426_s27 }
 0x644   :  { %1721 = vrot.lane.b32.xlu0 %v3675_v46, %s2426_s27 }
 0x646   :  { %1723 = vrot.lane.b32.xlu1 %v3689_v63, %s2426_s27 }
 0x648   :  { %1765 = vrot.lane.b32.xlu0 %v3672_v30, %s2425_s26 }
 0x64a   :  { %1767 = vrot.lane.b32.xlu1 %v3681_v39, %s2425_s26 }
 0x64c   :  { %1769 = vrot.lane.b32.xlu0 %v3675_v46, %s2425_s26 }
 0x64e   :  { %1771 = vrot.lane.b32.xlu1 %v3689_v63, %s2425_s26 }
 0x650   :  { %1781 = vrot.lane.b32.xlu0 %v3672_v30, %s2428_s29 }
 0x652   :  { %1783 = vrot.lane.b32.xlu1 %v3681_v39, %s2428_s29 }
 0x654   :  { %1785 = vrot.lane.b32.xlu0 %v3675_v46, %s2428_s29 }
 0x656   :  { %1787 = vrot.lane.b32.xlu1 %v3689_v63, %s2428_s29 }
 0x658   :  { %1749 = vrot.lane.b32.xlu0 %v3672_v30, %s2427_s28 }
 0x65a   :  { %1751 = vrot.lane.b32.xlu1 %v3681_v39, %s2427_s28 }
 0x65c   :  { %1753 = vrot.lane.b32.xlu0 %v3675_v46, %s2427_s28 }
 0x65e   :  { %1755 = vrot.lane.b32.xlu1 %v3689_v63, %s2427_s28 }
 0x660   :  { %1813 = vrot.lane.b32.xlu0 %v3672_v30, %s2429_s30 }
 0x662   :  { %1815 = vrot.lane.b32.xlu1 %v3681_v39, %s2429_s30 }
 0x664   :  { %1817 = vrot.lane.b32.xlu0 %v3675_v46, %s2429_s30 }
 0x666   :  { %1819 = vrot.lane.b32.xlu1 %v3689_v63, %s2429_s30 }
 0x668   :  { %1797 = vrot.lane.b32.xlu0 %v3672_v30, %s2430_s7 }
 0x66a   :  { %1799 = vrot.lane.b32.xlu1 %v3681_v39, %s2430_s7 }
 0x66c   :  { %1801 = vrot.lane.b32.xlu0 %v3675_v46, %s2430_s7 }
 0x66e   :  { %1803 = vrot.lane.b32.xlu1 %v3689_v63, %s2430_s7 }
 0x670   :  { %1829 = vrot.lane.b32.xlu0 %v3672_v30, %s2432_s8 }
 0x672   :  { %1831 = vrot.lane.b32.xlu1 %v3681_v39, %s2432_s8 }
 0x674   :  { %1833 = vrot.lane.b32.xlu0 %v3675_v46, %s2432_s8 }
 0x676   :  { %1835 = vrot.lane.b32.xlu1 %v3689_v63, %s2432_s8 }
 0x6aa   :  { %v1734_v40 = vpop.permute.xlu0 %1733 }
 0x6ac   :  { %v1736_v28 = vpop.permute.xlu1 %1735 }
 0x6ad   :  { %v1743_v1 = vsel %vm83_vm1, %v1734_v40, %v1736_v28 }
 0x6ae   :  { %v1738_v52 = vpop.permute.xlu0 %1737  ;;  %v1746_v2 = vmul.f32 %v1743_v1, %v4107_v31 }
 0x6af   :  { %v1742_v35 = vsel %vm83_vm1, %v1736_v28, %v1738_v52 }
 0x6b0   :  { %v1740_v59 = vpop.permute.xlu1 %1739  ;;  %v1747_v45 = vmul.f32 %v1742_v35, %v4108_v0  ;;  %v1918_v50 = vrot.slane %v1746_v2, 4 }
 0x6b1   :  { %v1741_v8 = vsel %vm83_vm1, %v1738_v52, %v1740_v59  ;;  %v1744_v20 = vsel %vm83_vm1, %v1740_v59, %v1734_v40 }
 0x6b2   :  { %v1718_v36 = vpop.permute.xlu0 %1717  ;;  %v1745_v3 = vmul.f32 %v1744_v20, %v4109_v61  ;;  %v1748_v56 = vmul.f32 %v1741_v8, %v4110_v27  ;;  %v1919_v4 = vrot.slane %v1747_v45, 4  ;;  %v4113_v8 = vld [vmem:[#allocation43_spill] sm:$0xff]  ;;  %v4115_v45 = vld [vmem:[#allocation44_spill] sm:$0xff] }
 0x6b4   :  { %v1720_v5 = vpop.permute.xlu1 %1719  ;;  %v1917_v40 = vrot.slane %v1745_v3, 4  ;;  %v1920_v28 = vrot.slane %v1748_v56, 4 }
 0x6b5   :  { %v1727_v42 = vsel %vm44_vm0, %v1718_v36, %v1720_v5 }
 0x6b6   :  { %v1730_v24 = vmul.f32 %v1727_v42, %v4111_v34  ;;  %v1722_v43 = vpop.permute.xlu0 %1721 }
 0x6b7   :  { %v1726_v14 = vsel %vm44_vm0, %v1720_v5, %v1722_v43 }
 0x6b8   :  { %v1731_v57 = vmul.f32 %v1726_v14, %v4072_v54  ;;  %v1724_v23 = vpop.permute.xlu1 %1723  ;;  %v1966_v48 = vsel %vm424_vm4, %v1730_v24, %v1918_v50 }
 0x6b9   :  { %v1725_v38 = vsel %vm44_vm0, %v1722_v43, %v1724_v23  ;;  %v1728_v49 = vsel %vm44_vm0, %v1724_v23, %v1718_v36  ;;  %v2355_v29 = vpack.c.bf16 %v1966_v48, %v4112_v62  ;;  %v4114_v36 = vld [vmem:[#allocation29_spill] sm:$0xff] }
 0x6ba   :  { %v1729_v52 = vmul.f32 %v1728_v49, %v4073_v15  ;;  %v1732_v1 = vmul.f32 %v1725_v38, %v4074_v33  ;;  %v1766_v59 = vpop.permute.xlu0 %1765  ;;  %v1967_v54 = vsel %vm424_vm4, %v1731_v57, %v1919_v4  ;;  %v4116_v57 = vld [vmem:[#allocation14_spill] sm:$0xff]  ;;  %v4117_v38 = vld [vmem:[#allocation15_spill] sm:$0xff] }
 0x6bb   :  { %2356 = vmatprep.subr.bf16.mxu0 %v2355_v29  ;;  %v2387_v42 = vpack.c.bf16 %v1967_v54, %v4115_v45 }
 0x6bc   :  { %v1965_v31 = vsel %vm424_vm4, %v1729_v52, %v1917_v40  ;;  %v1768_v2 = vpop.permute.xlu1 %1767  ;;  %v1968_v35 = vsel %vm424_vm4, %v1732_v1, %v1920_v28 }
 0x6bd   :  { %v2357_v20 = vpack.c.bf16 %v1965_v31, %v4113_v8  ;;  %v2385_v5 = vpack.c.bf16 %v1968_v35, %v4114_v36  ;;  %v1775_v3 = vsel %vm163_vm3, %v1766_v59, %v1768_v2  ;;  %v4118_v35 = vld [vmem:[#allocation9_spill] sm:$0xff] }
 0x6be   :  { %v1770_v0 = vpop.permute.xlu0 %1769  ;;  %v1778_v23 = vmul.f32 %v1775_v3, %v4116_v57 }
 0x6bf   :  { %2358 = vmatpush1.bf16.msra.mxu0 %v2357_v20  ;;  %2386 = vmatprep.subr.bf16.mxu1 %v2385_v5  ;;  %v1774_v56 = vsel %vm163_vm3, %v1768_v2, %v1770_v0  ;;  %v4119_v20 = vld [vmem:[#allocation18_spill] sm:$0xff] }
 0x6c0   :  { %2388 = vmatpush1.bf16.msra.mxu1 %v2387_v42  ;;  %v1772_v15 = vpop.permute.xlu1 %1771  ;;  %v1779_v49 = vmul.f32 %v1774_v56, %v4117_v38  ;;  %v1930_v31 = vrot.slane %v1778_v23, 4 }
 0x6c1   :  { %v1773_v62 = vsel %vm163_vm3, %v1770_v0, %v1772_v15  ;;  %v1776_v29 = vsel %vm163_vm3, %v1772_v15, %v1766_v59 }
 0x6c2   :  { %v1782_v33 = vpop.permute.xlu0 %1781  ;;  %v1777_v2 = vmul.f32 %v1776_v29, %v4070_v6  ;;  %v1780_v8 = vmul.f32 %v1773_v62, %v4118_v35  ;;  %v1931_v59 = vrot.slane %v1779_v49, 4 }
 0x6c4   :  { %v1784_v50 = vpop.permute.xlu1 %1783  ;;  %v1929_v3 = vrot.slane %v1777_v2, 4 }
 0x6c5   :  { %v1791_v34 = vsel %vm203_vm5, %v1782_v33, %v1784_v50 }
 0x6c6   :  { %v1786_v61 = vpop.permute.xlu0 %1785 }
 0x6c7   :  { %v1790_v27 = vsel %vm203_vm5, %v1784_v50, %v1786_v61 }
 0x6c8   :  { %v1794_v24 = vmul.f32 %v1790_v27, %v2711_v16  ;;  %v1788_v43 = vpop.permute.xlu1 %1787  ;;  %v1793_v16 = vmul.f32 %v1791_v34, %v2705_v11  ;;  %v1932_v27 = vrot.slane %v1780_v8, 4 }
 0x6c9   :  { %v1792_v14 = vsel %vm203_vm5, %v1788_v43, %v1782_v33  ;;  %v1789_v48 = vsel %vm203_vm5, %v1786_v61, %v1788_v43 }
 0x6ca   :  { %v1750_v4 = vpop.permute.xlu0 %1749  ;;  %v1942_v40 = vrot.slane %v1794_v24, 4  ;;  %v1796_v28 = vmul.f32 %v1792_v14, %v2708_v12  ;;  %v1795_v1 = vmul.f32 %v1789_v48, %v2714_v17  ;;  %v1941_v0 = vrot.slane %v1793_v16, 4 }
 0x6cc   :  { %v1752_v52 = vpop.permute.xlu1 %1751  ;;  %v1944_v12 = vrot.slane %v1796_v28, 4  ;;  %v1974_v15 = vsel %vm424_vm4, %v3681_v39, %v1942_v40  ;;  %v1943_v6 = vrot.slane %v1795_v1, 4  ;;  %v1973_v39 = vsel %vm424_vm4, %v3672_v30, %v1941_v0 }
 0x6cd   :  { %v1759_v54 = vsel %vm123_vm2, %v1750_v4, %v1752_v52 }
 0x6ce   :  { %v1762_v36 = vmul.f32 %v1759_v54, %v4119_v20  ;;  %v1754_v5 = vpop.permute.xlu0 %1753  ;;  %v1976_v23 = vsel %vm424_vm4, %v3689_v63, %v1944_v12 }
 0x6cf   :  { %v1758_v11 = vsel %vm123_vm2, %v1752_v52, %v1754_v5 }
 0x6d0   :  { %v1763_v45 = vmul.f32 %v1758_v11, %v4075_v22  ;;  %v1756_v17 = vpop.permute.xlu1 %1755  ;;  %v1970_v42 = vsel %vm424_vm4, %v1762_v36, %v1930_v31 }
 0x6d1   :  { %v1757_v33 = vsel %vm123_vm2, %v1754_v5, %v1756_v17  ;;  %v1760_v50 = vsel %vm123_vm2, %v1756_v17, %v1750_v4  ;;  %v2359_v61 = vpack.c.bf16 %v1974_v15, %v1970_v42 }
 0x6d2   :  { %v1761_v56 = vmul.f32 %v1760_v50, %v2640_v53  ;;  %v1764_v22 = vmul.f32 %v1757_v33, %v2650_v58  ;;  %v1814_v34 = vpop.permute.xlu0 %1813  ;;  %v1971_v24 = vsel %vm424_vm4, %v1763_v45, %v1931_v59  ;;  %v1975_v53 = vsel %vm424_vm4, %v3675_v46, %v1943_v6 }
 0x6d3   :  { %2360 = vmatprep.subr.bf16.mxu0 %v2359_v61  ;;  %v2391_v38 = vpack.c.bf16 %v1975_v53, %v1971_v24 }
 0x6d4   :  { %v1969_v43 = vsel %vm424_vm4, %v1761_v56, %v1929_v3  ;;  %v1816_v14 = vpop.permute.xlu1 %1815  ;;  %v1972_v57 = vsel %vm424_vm4, %v1764_v22, %v1932_v27 }
 0x6d5   :  { %v2361_v48 = vpack.c.bf16 %v1973_v39, %v1969_v43  ;;  %v2389_v58 = vpack.c.bf16 %v1976_v23, %v1972_v57  ;;  %v1823_v16 = vsel %vm283_vm6, %v1814_v34, %v1816_v14 }
 0x6d6   :  { %v1818_v4 = vpop.permute.xlu0 %1817  ;;  %v1825_v1 = vmul.f32 %v1823_v16, %v2717_v18 }
 0x6d7   :  { %2362 = vmatpush1.bf16.msra.mxu0 %v2361_v48  ;;  %2390 = vmatprep.subr.bf16.mxu1 %v2389_v58  ;;  %v1822_v63 = vsel %vm283_vm6, %v1816_v14, %v1818_v4  ;;  %v2434_v58 = vmov 0  }
 0x6d8   :  { %2392 = vmatpush1.bf16.msra.mxu1 %v2391_v38  ;;  %v1820_v49 = vpop.permute.xlu1 %1819  ;;  %v1826_v31 = vmul.f32 %v1822_v63, %v2727_v26  ;;  %v1953_v0 = vrot.slane %v1825_v1, 4  ;;  %2410 = vset.pattern.permute.xlu0 %v2434_v58 }
 0x6d9   :  { %v1821_v46 = vsel %vm283_vm6, %v1818_v4, %v1820_v49  ;;  %v1824_v28 = vsel %vm283_vm6, %v1820_v49, %v1814_v34  ;;  %v1985_v34 = vld [vmem:[%s3926_s3] sm:$0xf]  ;;  %2411 = vset.pattern.permute.xlu1 %v2434_v58 }
 0x6da   :  { %v1798_v30 = vpop.permute.xlu0 %1797  ;;  %v1827_v2 = vmul.f32 %v1821_v46, %v2744_v47  ;;  %v1828_v36 = vmul.f32 %v1824_v28, %v2724_v32  ;;  %v1954_v32 = vrot.slane %v1826_v31, 4  ;;  %v2151_v4 = vld [vmem:[%s3927_s4] sm:$0xf] }
 0x6dc   :  { %v1800_v62 = vpop.permute.xlu1 %1799  ;;  %v1955_v17 = vrot.slane %v1827_v2, 4  ;;  %v1956_v33 = vrot.slane %v1828_v36, 4 }
 0x6dd   :  { %v1807_v35 = vsel %vm243_vm7, %v1798_v30, %v1800_v62 }
 0x6de   :  { %v1802_v29 = vpop.permute.xlu0 %1801  ;;  %v1809_v11 = vmul.f32 %v1807_v35, %v2751_v51 }
 0x6df   :  { %v1806_v54 = vsel %vm243_vm7, %v1800_v62, %v1802_v29 }
 0x6e0   :  { %v1804_v40 = vpop.permute.xlu1 %1803  ;;  %v1810_v59 = vmul.f32 %v1806_v54, %v2769_v10 }
 0x6e1   :  { %v1805_v8 = vsel %vm243_vm7, %v1802_v29, %v1804_v40  ;;  %v1808_v5 = vsel %vm243_vm7, %v1804_v40, %v1798_v30  ;;  %v2193_v30 = vld [vmem:[%s3927_s4] sm:$0xf] }
 0x6e2   :  { %v1830_v52 = vpop.permute.xlu0 %1829  ;;  %v1811_v12 = vmul.f32 %v1805_v8, %v2772_v21  ;;  %v1812_v42 = vmul.f32 %v1808_v5, %v2766_v9  ;;  %v1978_v21 = vsel %vm424_vm4, %v1810_v59, %v1954_v32 }
 0x6e4   :  { %v1832_v20 = vpop.permute.xlu1 %1831  ;;  %v1979_v13 = vsel %vm424_vm4, %v1811_v12, %v1955_v17  ;;  %v1980_v27 = vsel %vm424_vm4, %v1812_v42, %v1956_v33 }
 0x6e5   :  { %v1839_v18 = vsel %vm323_vm8, %v1830_v52, %v1832_v20 }
 0x6e6   :  { %v1841_v26 = vmul.f32 %v1839_v18, %v2776_v37  ;;  %v1834_v47 = vpop.permute.xlu0 %1833  ;;  %v2162_v18 = vld [vmem:[%s3928_s5] sm:$0xf] }
 0x6e7   :  { %v1838_v45 = vsel %vm323_vm8, %v1832_v20, %v1834_v47 }
 0x6e8   :  { %v1842_v15 = vmul.f32 %v1838_v45, %v2814_v41  ;;  %v1836_v6 = vpop.permute.xlu1 %1835  ;;  %v1981_v10 = vsel %vm424_vm4, %v1841_v26, %v2824_v7  ;;  %v1977_v7 = vsel %vm424_vm4, %v1809_v11, %v1953_v0 }
 0x6e9   :  { %v1837_v37 = vsel %vm323_vm8, %v1834_v47, %v1836_v6  ;;  %v1840_v51 = vsel %vm323_vm8, %v1836_v6, %v1830_v52  ;;  %v2366_v56 = vpack.c.bf16 %v1981_v10, %v1977_v7  ;;  %v2203_v47 = vld [vmem:[%s3928_s5] sm:$0xf] }
 0x6ea   :  { %v1982_v50 = vsel %vm424_vm4, %v1842_v15, %v2829_v55  ;;  %v1843_v9 = vmul.f32 %v1837_v37, %v2817_v44  ;;  %v1844_v41 = vmul.f32 %v1840_v51, %v2792_v60 }
 0x6eb   :  { %v2363_v3 = vpack.c.bf16 %v1982_v50, %v1978_v21 }
 0x6ec   :  { %v1983_v55 = vsel %vm424_vm4, %v1843_v9, %v4058_v19  ;;  %v1984_v60 = vsel %vm424_vm4, %v1844_v41, %v4057_v25 }
 0x6ed   :  { %v2396_v44 = vpack.c.bf16 %v1983_v55, %v1979_v13  ;;  %2365 = vmatprep.subr.msk.bf16.mxu0 %vm3871_vm12, %v2363_v3  ;;  %v2393_v22 = vpack.c.bf16 %v1984_v60, %v1980_v27  ;;  %v2422_v13 = vld [vmem:[%s3923_s1] sm:$0xff]  ;;  %v4122_v27 = vld [vmem:[#allocation5_spill] sm:$0xff] }
 0x6ee   :  { %2368 = vmatpush1.bf16.msk.msra.mxu0 %vm3871_vm12, %v2366_v56 }
 0x6ef   :  { %2395 = vmatprep.subr.msk.bf16.mxu1 %vm3871_vm12, %v2393_v22  ;;  %v2423_v22 = vld [vmem:[%s3923_s1 + $0x8] sm:$0xff] }
 0x6f0   :  { %2398 = vmatpush1.bf16.msk.msra.mxu1 %vm3871_vm12, %v2396_v44 }
 0x6f1   :  { %2269 = vmatmul.mubr.msk.f32.vlgmr.msra.gmra.mrb[8].mxu0 %vm1986_vm13, %v1985_v34 }
 0x6f3   :  { %2272 = vmatmul.mubr.msk.f32.vlgmr.msra.gmra.mrb[8].mxu1 %vm1986_vm13, %v1985_v34 }
 0x7c4   :  { %v2068_v25 = vpop.f32.mrb[8].mxu0 }
 0x7c5   :  { %v2144_v19 = vsel %vm424_vm4, %v2068_v25, 0.0  ;;  %v2070_v24 = vpop.f32.mrb[9].mxu0 }
 0x7c6   :  { %v2145_v39 = vsel %vm424_vm4, %v2070_v24, 0.0  ;;  %v2139_v43 = vpop.f32.mrb[8].mxu1 }
 0x7c7   :  { %v2146_v14 = vadd.f32 %v2145_v39, %v2144_v19  ;;  %v2187_v57 = vsel %vm424_vm4, %v2139_v43, 0.0  ;;  %v2141_v23 = vpop.f32.mrb[9].mxu1 }
 0x7c8   :  { %v2188_v53 = vsel %vm424_vm4, %v2141_v23, 0.0 }
 0x7c9   :  { %v2189_v48 = vadd.f32 %v2188_v53, %v2187_v57  ;;  %2147 = vadd.xlane.f32.xlu0 %v2146_v14 }
 0x7cb   :  { %2190 = vadd.xlane.f32.xlu1 %v2189_v48 }
 0x856   :  { %v2148_v38 = vpop.xlane.xlu0 %2147 }
 0x857   :  { %v2150_v49 = vmul.f32 0.00390625, %v2148_v38 }
 0x858   :  { %v2191_v62 = vpop.xlane.xlu1 %2190 }
 0x859   :  { %v2152_v29 = vmul.f32 %v2151_v4, %v2150_v49  ;;  %v2192_v16 = vmul.f32 0.00390625, %v2191_v62 }
 0x85b   :  { %v2154_v40 = vsel %vm2153_vm14, %v2152_v29, 0.0  ;;  %v2194_v63 = vmul.f32 %v2193_v30, %v2192_v16 }
 0x85c   :  { %v2155_v46 = vrot.slane %v2154_v40, 4 }
 0x85d   :  { %v2195_v28 = vsel %vm2153_vm14, %v2194_v63, 0.0 }
 0x85e   :  { %v2156_v52 = vadd.f32 %v2155_v46, %v2154_v40  ;;  %v2196_v1 = vrot.slane %v2195_v28, 4 }
 0x860   :  { %v2157_v54 = vrot.slane %v2156_v52, 2  ;;  %v2197_v31 = vadd.f32 %v2196_v1, %v2195_v28 }
 0x862   :  { %v2158_v2 = vadd.f32 %v2157_v54, %v2156_v52  ;;  %v2198_v35 = vrot.slane %v2197_v31, 2 }
 0x864   :  { %v2159_v8 = vrot.slane %v2158_v2, 1  ;;  %v2199_v20 = vadd.f32 %v2198_v35, %v2197_v31 }
 0x866   :  { %v2160_v36 = vadd.f32 %v2159_v8, %v2158_v2  ;;  %v2200_v5 = vrot.slane %v2199_v20, 1 }
 0x868   :  { %v2161_v59 = vmax.f32 %v2160_v36, 0.0  ;;  %v2201_v26 = vadd.f32 %v2200_v5, %v2199_v20 }
 0x86a   :  { %v2163_v0 = vmul.f32 %v2162_v18, %v2161_v59  ;;  %v2202_v11 = vmax.f32 %v2201_v26, 0.0 }
 0x86c   :  { %v2273_v12 = vmul.f32 -1.442695, %v2163_v0  ;;  %v2204_v45 = vmul.f32 %v2203_v47, %v2202_v11 }
 0x86e   :  { %2414 = vpow2.f32 %v2273_v12  ;;  %v2274_v32 = vmul.f32 -1.442695, %v2204_v45 }
 0x870   :  { %2416 = vpow2.f32 %v2274_v32 }
 0x878   :  { %v2415_v17 = vpop.eup %2414 }
 0x879   :  { %v2168_v42 = vadd.f32 1.0, %v2415_v17 }
 0x87a   :  { %v2417_v15 = vpop.eup %2416 }
 0x87b   :  { %2418 = vrcp.f32 %v2168_v42  ;;  %v2209_v6 = vadd.f32 1.0, %v2417_v15 }
 0x87d   :  { %2420 = vrcp.f32 %v2209_v6 }
 0x885   :  { %v2419_v33 = vpop.eup %2418 }
 0x886   :  { %2173 = vperm.xlu0 %2410, %v2419_v33  }
 0x887   :  { %v2421_v10 = vpop.eup %2420 }
 0x888   :  { %2214 = vperm.xlu1 %2411, %v2421_v10  }
 0x905   :  { %v2174_v37 = vpop.permute.xlu0 %2173 }
 0x906   :  { %v2176_v51 = vmul.f32 %v2174_v37, %v2068_v25  ;;  %v2177_v21 = vmul.f32 %v2174_v37, %v2070_v24  ;;  %v4123_v25 = vld [vmem:[#allocation4_spill] sm:$0xff] }
 0x907   :  { %v2215_v50 = vpop.permute.xlu1 %2214 }
 0x908   :  { %v2178_v9 = vmax.f32 %v2176_v51, 0.0  ;;  %v2179_v41 = vmax.f32 %v2177_v21, 0.0  ;;  %v2217_v61 = vmul.f32 %v2215_v50, %v2139_v43  ;;  %v2218_v7 = vmul.f32 %v2215_v50, %v2141_v23 }
 0x90a   :  { %v2180_v3 = vadd.f32 %v2422_v13, %v2178_v9  ;;  %v2181_v56 = vadd.f32 %v2179_v41, %v4122_v27  ;;  %v2219_v55 = vmax.f32 %v2217_v61, 0.0  ;;  %v2220_v60 = vmax.f32 %v2218_v7, 0.0 }
 0x90c   :  { %v2184_v44 = vcombine.low %v2180_v3, %v2181_v56  ;;  %v2221_v34 = vadd.f32 %v2423_v22, %v2219_v55  ;;  %v2222_v19 = vadd.f32 %v2220_v60, %v4123_v25 }
 0x90e   :  { %2186 = vst [vmem:[%s3929_s6] sm:$0xff] %v2184_v44  ;;  %v2225_v24 = vcombine.low %v2221_v34, %v2222_v19 }
 0x910   :  { %2227 = vst [vmem:[%s3929_s6 + $0x8] sm:$0xff] %v2225_v24 }

</bundles_post_ra>
